<compile_context>
chip_gen: v7x
topology: tpu7x:2x2x1
jax: 0.10.0
libtpu: 0.0.40
codegen_flags: <defaults>
</compile_context>

<pallas_src>
import functools

import jax
import jax.numpy as jnp
from jax.experimental import pallas as pl
from jax.experimental.pallas import tpu as pltpu


def _round_up(x, m):
    return (x + m - 1) // m * m


# ----------------------------- Pallas kernel ---------------------------------
def _moe_reordered_kernel(x_ref, idx_ref, scr_ref, h_ref, wu_ref, wv_ref,
                          out_ref, *, hk):
    """One token tile of the fused low-rank MoE (reordered execution).

    x_ref   : (tm, dp)    compute dtype (bf16)   padded tokens
    idx_ref : (tm, hk)    int32                  flattened (head, k) expert ids
    scr_ref : (tm, hk)    f32                    scores pre-scaled by 1/num_heads
    h_ref   : (Ep, dhp)   compute dtype          precomputed swish(latents @ W1)
    wu_ref  : (dp, dhp)   compute dtype
    wv_ref  : (dhp, dp)   compute dtype
    out_ref : (tm, dp)    out dtype
    """
    x = x_ref[...]
    h_all = h_ref[...]

    # 1) token -> hidden projection (one MXU matmul per tile)
    x_proj = jnp.dot(x, wu_ref[...],
                     preferred_element_type=jnp.float32)        # (tm, dhp) f32

    # 2) all token/expert dot products in a single matmul:
    #    G[t, e] = <x_proj[t], h_all[e]>
    # NOTE: operands are bf16 (f32 accumulation); gating fidelity is bf16-limited.
    g = jax.lax.dot_general(
        x_proj.astype(h_all.dtype), h_all,
        dimension_numbers=(((1,), (1,)), ((), ())),
        preferred_element_type=jnp.float32)                     # (tm, Ep) f32

    tm, num_experts = g.shape
    expert_iota = jax.lax.broadcasted_iota(jnp.int32, (tm, num_experts), 1)

    # 3) gating: one swish over the whole tile (EUP slot), then a VPU-only
    #    compare+FMA scatter of the scores:
    #        S[t, e]   = sum_j score[t, j] * 1[e == idx[t, j]]
    #        w_acc     = f(G) * S
    #    Identical to the per-slot formulation because the one-hot forces
    #    e == idx_j, i.e. f(G[t, idx_j]) == f(G[t, e]).  Padded token rows
    #    have score == 0 -> S == 0 -> zero output (do not break this invariant).
    f = g * jax.nn.sigmoid(1.702 * g)                           # (tm, Ep) f32
    s = jnp.zeros((tm, num_experts), jnp.float32)
    for j in range(hk):                                         # small static loop
        idx = idx_ref[:, j:j + 1]                               # (tm, 1) int32
        score = scr_ref[:, j:j + 1]                             # (tm, 1) incl. 1/H
        s = s + jnp.where(expert_iota == idx, score, 0.0)
    w_acc = f * s                                               # (tm, Ep) f32

    # 4) two large MXU matmuls: experts -> hidden, hidden -> tokens
    acc = jnp.dot(w_acc.astype(h_all.dtype), h_all,
                  preferred_element_type=jnp.float32)           # (tm, dhp)
    out_ref[...] = jnp.dot(acc.astype(wv_ref.dtype), wv_ref[...],
                           preferred_element_type=jnp.float32
                           ).astype(out_ref.dtype)              # (tm, dp)


# ------------------------- one-time weight preparation ------------------------
def prepare_moe_weights(latents, W1, W_u, W_v, *, compute_dtype=jnp.bfloat16,
                        expert_align=128, hidden_align=128, model_align=128):
    """Hoisted, call ONCE: swish(latents @ W1) + padding + cast of all weights."""
    num_experts, _ = latents.shape
    d_model, d_hidden = W_u.shape

    h_all = latents.astype(jnp.float32) @ W1.astype(jnp.float32)   # (E, dh)
    h_all = h_all * jax.nn.sigmoid(1.702 * h_all)

    ep = _round_up(num_experts, expert_align)    # MXU lane fill for E matmuls
    dhp = _round_up(d_hidden, hidden_align)
    dp = _round_up(d_model, model_align)         # lane-dense output stores

    h_p = jnp.zeros((ep, dhp), compute_dtype).at[:num_experts, :d_hidden].set(
        h_all.astype(compute_dtype))
    wu_p = jnp.zeros((dp, dhp), compute_dtype).at[:d_model, :d_hidden].set(
        W_u.astype(compute_dtype))
    wv_p = jnp.zeros((dhp, dp), compute_dtype).at[:d_hidden, :d_model].set(
        W_v.astype(compute_dtype))

    return dict(h_all=h_p, W_u=wu_p, W_v=wv_p,
                d_model=d_model, d_hidden=d_hidden, num_experts=num_experts,
                dp=dp, dhp=dhp, ep=ep, compute_dtype=compute_dtype)


def _vmem_limit_bytes():
    # Per-generation limit (~0.75x physical VMEM); safe fallback if unavailable.
    try:
        cap = pltpu.get_tpu_info().vmem_capacity_bytes
        return int(cap * 0.75)
    except Exception:
        return 64 * 1024 * 1024


def _pick_tm(n_tokens, tm_max):
    # At least 2 grid steps so both v7x TensorCores get work; tiles mult. of 8.
    half = _round_up(max(-(-n_tokens // 2), 8), 8)
    return max(8, min(tm_max, half))


# --------------------------------- wrapper ------------------------------------
def fused_low_rank_moe_reordered(x_flat, indices, scores, weights, *,
                                 num_heads, top_k, tm=256, out_dtype=None):
    """x_flat: (n_tokens, d_model); indices/scores: (n_tokens, num_heads, top_k);
    weights: output of prepare_moe_weights (precomputed once)."""
    n_tokens, d_model = x_flat.shape
    assert d_model == weights["d_model"]
    hk = num_heads * top_k
    compute_dtype = weights["compute_dtype"]
    dp, dhp, ep = weights["dp"], weights["dhp"], weights["ep"]
    out_dtype = x_flat.dtype if out_dtype is None else out_dtype

    tm = _pick_tm(n_tokens, tm)
    n_pad = _round_up(n_tokens, tm)

    # Activation-side padding only when actually needed.
    if n_pad == n_tokens and dp == d_model and x_flat.dtype == compute_dtype:
        x_p = x_flat
    else:
        x_p = jnp.zeros((n_pad, dp), compute_dtype).at[:n_tokens, :d_model].set(
            x_flat.astype(compute_dtype))

    idx_flat = indices.reshape(n_tokens, hk).astype(jnp.int32)
    # 1/num_heads folded into the scores; padded rows keep score == 0 so their
    # contribution (and output row) is exactly zero.
    scr_flat = scores.reshape(n_tokens, hk).astype(jnp.float32) / float(num_heads)
    if n_pad == n_tokens:
        idx_p, scr_p = idx_flat, scr_flat
    else:
        idx_p = jnp.zeros((n_pad, hk), jnp.int32).at[:n_tokens].set(idx_flat)
        scr_p = jnp.zeros((n_pad, hk), jnp.float32).at[:n_tokens].set(scr_flat)

    kernel = functools.partial(_moe_reordered_kernel, hk=hk)
    grid = (n_pad // tm,)

    def build(single_buffer_weights):
        # Constant-index weights never get re-DMA'd: single-buffer them to
        # halve their VMEM footprint (default pipelining allocates 2 buffers).
        w_kw = (dict(pipeline_mode=pl.Buffered(1))
                if single_buffer_weights else {})
        return pl.pallas_call(
            kernel,
            out_shape=jax.ShapeDtypeStruct((n_pad, dp), out_dtype),
            grid_spec=pltpu.PrefetchScalarGridSpec(
                num_scalar_prefetch=0,
                grid=grid,
                in_specs=[
                    pl.BlockSpec((tm, dp), lambda i: (i, 0)),            # x
                    pl.BlockSpec((tm, hk), lambda i: (i, 0)),            # indices
                    pl.BlockSpec((tm, hk), lambda i: (i, 0)),            # scores
                    pl.BlockSpec((ep, dhp), lambda i: (0, 0), **w_kw),   # h_all
                    pl.BlockSpec((dp, dhp), lambda i: (0, 0), **w_kw),   # W_u
                    pl.BlockSpec((dhp, dp), lambda i: (0, 0), **w_kw),   # W_v
                ],
                out_specs=pl.BlockSpec((tm, dp), lambda i: (i, 0)),
            ),
            compiler_params=pltpu.CompilerParams(
                dimension_semantics=("parallel",),
                vmem_limit_bytes=_vmem_limit_bytes()),
        )

    args = (x_p, idx_p, scr_p, weights["h_all"], weights["W_u"], weights["W_v"])
    try:
        out = jax.block_until_ready(build(True)(*args))
    except Exception:
        # Fallback if this JAX build rejects single-buffered BlockSpecs.
        out = jax.block_until_ready(build(False)(*args))

    return out[:n_tokens, :d_model]


# ------------------------------ pure-JAX reference ---------------------------
def _reference(x_flat, indices, scores, latents, W1, W_u, W_v,
               *, num_heads, top_k):
    x_proj = x_flat @ W_u                                    # (N, dh)
    h_all = latents @ W1                                     # (E, dh)
    h_all = h_all * jax.nn.sigmoid(1.702 * h_all)
    out = jnp.zeros_like(x_flat)
    for head in range(num_heads):
        for k in range(top_k):
            idx = indices[:, head, k]                        # (N,)
            score = scores[:, head, k]                       # (N,)
            h = h_all[idx]                                   # (N, dh)
            dot = jnp.sum(h * x_proj, axis=-1)
            act = dot * jax.nn.sigmoid(1.702 * dot) * score
            out = out + (act[:, None] * h) @ W_v
    return out / num_heads


# ----------------------------------- main -------------------------------------
if __name__ == "__main__":
    # Small config consistent with the module's __init__
    batch, seq = 2, 8
    d_model = 32
    d_latent = 16
    d_hidden = 32          # config.d_intermediate_hypernet
    num_experts = 8
    num_heads = 2          # config.num_routing_heads
    top_k = 2

    key = jax.random.PRNGKey(0)
    k_x, k_lat, k_w1, k_w2, k_rtr = jax.random.split(key, 5)

    x = jax.random.normal(k_x, (batch, seq, d_model), jnp.float32)
    x_flat = x.reshape(-1, d_model)
    n_tokens = x_flat.shape[0]

    # Deterministic parameter init (shapes match the PyTorch module)
    expert_latents = jax.random.normal(k_lat, (num_experts, d_latent),
                                       jnp.float32) * 0.1
    # ExpertGenerationNetwork: net[0]: Linear(d_latent, d_hidden),
    #                          net[2]: Linear(d_hidden, 2*d_model)
    W1 = jax.random.normal(k_w1, (d_latent, d_hidden), jnp.float32) * 0.1
    W2 = jax.random.normal(k_w2, (d_hidden, 2 * d_model), jnp.float32) * 0.1
    W_u = W2[:, :d_model].T            # (d_model, d_hidden)
    W_v = W2[:, d_model:]              # (d_hidden, d_model)

    # TODO(synk): ProductKeyRouter definition not provided; use a simple
    # deterministic linear router (top-k of logits, softmax over selected).
    W_router = jax.random.normal(k_rtr, (d_model, num_heads * num_experts),
                                 jnp.float32) * 0.1
    logits = (x_flat @ W_router).reshape(n_tokens, num_heads, num_experts)
    top_vals, expert_indices = jax.lax.top_k(logits, top_k)   # (N, H, K)
    scores = jax.nn.softmax(top_vals, axis=-1)

    # One-time weight preparation (hoisted out of the per-call path).
    weights = prepare_moe_weights(expert_latents, W1, W_u, W_v)

    out = fused_low_rank_moe_reordered(
        x_flat, expert_indices, scores, weights,
        num_heads=num_heads, top_k=top_k)
    out = jax.block_until_ready(out)

    ref = _reference(x_flat, expert_indices, scores, expert_latents,
                     W1, W_u, W_v, num_heads=num_heads, top_k=top_k)

    assert out.shape == (n_tokens, d_model)
    # bf16 matmul operands (f32 accumulation): relative-error budget check.
    err = float(jnp.max(jnp.abs(out.astype(jnp.float32) - ref)))
    scale = float(jnp.max(jnp.abs(ref))) + 1e-8
    assert err <= 5e-2 * scale + 1e-6, (err, scale)

    # reshape back to (batch, seq, d_model) like the module does
    _ = out.reshape(batch, seq, d_model)
    print("KERNEL_OK")
</pallas_src>

<mosaic_0001>
module attributes {stable_mosaic.version = 11 : i64} {
  func.func @_moe_reordered_kernel(%arg0: i32, %arg1: memref<8x128xbf16, #tpu.memory_space<vmem>>, %arg2: memref<8x4xi32, #tpu.memory_space<vmem>>, %arg3: memref<8x4xf32, #tpu.memory_space<vmem>>, %arg4: memref<128x128xbf16, #tpu.memory_space<vmem>>, %arg5: memref<128x128xbf16, #tpu.memory_space<vmem>>, %arg6: memref<128x128xbf16, #tpu.memory_space<vmem>>, %arg7: memref<8x128xf32, #tpu.memory_space<vmem>>) attributes {dimension_semantics = [#tpu.dimension_semantics<parallel>], iteration_bounds = array<i64: 2>, scalar_prefetch = 0 : i64, scratch_operands = 0 : i64, tpu.core_type = #tpu.core_type<tc>, window_params = [{transform_indices = @transform_0, window_bounds = array<i64: 8, 128>}, {transform_indices = @transform_1, window_bounds = array<i64: 8, 4>}, {transform_indices = @transform_2, window_bounds = array<i64: 8, 4>}, {pipeline_mode = #tpu.pipeline_mode<synchronous>, transform_indices = @transform_3, window_bounds = array<i64: 128, 128>}, {pipeline_mode = #tpu.pipeline_mode<synchronous>, transform_indices = @transform_4, window_bounds = array<i64: 128, 128>}, {pipeline_mode = #tpu.pipeline_mode<synchronous>, transform_indices = @transform_5, window_bounds = array<i64: 128, 128>}, {transform_indices = @transform_6, window_bounds = array<i64: 8, 128>}]} {
    %c0 = arith.constant 0 : index
    %c0_0 = arith.constant 0 : index
    %0 = vector.load %arg1[%c0, %c0_0] : memref<8x128xbf16, #tpu.memory_space<vmem>>, vector<8x128xbf16>
    %c0_1 = arith.constant 0 : index
    %c0_2 = arith.constant 0 : index
    %1 = vector.load %arg4[%c0_1, %c0_2] : memref<128x128xbf16, #tpu.memory_space<vmem>>, vector<128x128xbf16>
    %c0_3 = arith.constant 0 : index
    %c0_4 = arith.constant 0 : index
    %2 = vector.load %arg5[%c0_3, %c0_4] : memref<128x128xbf16, #tpu.memory_space<vmem>>, vector<128x128xbf16>
    %cst = arith.constant dense<0.000000e+00> : vector<8x128xf32>
    %3 = tpu.matmul %0, %2, %cst {dimension_numbers = #tpu.dot_dimension_numbers<[1], [0], [0], [1], [0, 0, 1, 1], [], []>} : vector<8x128xbf16>, vector<128x128xbf16>, vector<8x128xf32> -> vector<8x128xf32>
    %4 = arith.truncf %3 : vector<8x128xf32> to vector<8x128xbf16>
    %cst_5 = arith.constant dense<0.000000e+00> : vector<8x128xf32>
    %5 = tpu.matmul %4, %1, %cst_5 {dimension_numbers = #tpu.dot_dimension_numbers<[1], [1], [0], [0], [0, 0, 1, 0], [], []>} : vector<8x128xbf16>, vector<128x128xbf16>, vector<8x128xf32> -> vector<8x128xf32>
    %6 = tpu.iota {dimensions = array<i32: 1>} : vector<8x128xi32>
    %cst_6 = arith.constant 1.702000e+00 : f32
    %7 = vector.broadcast %cst_6 : f32 to vector<8x128xf32>
    %8 = arith.mulf %7, %5 : vector<8x128xf32>
    %9 = arith.negf %8 : vector<8x128xf32>
    %10 = math.exp %9 : vector<8x128xf32>
    %cst_7 = arith.constant 1.000000e+00 : f32
    %11 = vector.broadcast %cst_7 : f32 to vector<8x128xf32>
    %12 = arith.addf %11, %10 : vector<8x128xf32>
    %13 = arith.divf %11, %12 : vector<8x128xf32>
    %14 = arith.mulf %5, %13 : vector<8x128xf32>
    %cst_8 = arith.constant 0.000000e+00 : f32
    %15 = vector.broadcast %cst_8 : f32 to vector<8x128xf32>
    %c0_9 = arith.constant 0 : index
    %c0_10 = arith.constant 0 : index
    %16 = vector.load %arg2[%c0_9, %c0_10] : memref<8x4xi32, #tpu.memory_space<vmem>>, vector<8x1xi32>
    %c0_11 = arith.constant 0 : index
    %c0_12 = arith.constant 0 : index
    %17 = vector.load %arg3[%c0_11, %c0_12] : memref<8x4xf32, #tpu.memory_space<vmem>>, vector<8x1xf32>
    %18 = vector.broadcast %16 : vector<8x1xi32> to vector<8x128xi32>
    %19 = arith.cmpi eq, %6, %18 : vector<8x128xi32>
    %cst_13 = arith.constant 0.000000e+00 : f32
    %20 = vector.shape_cast %17 : vector<8x1xf32> to vector<8x1xf32>
    %21 = vector.broadcast %20 : vector<8x1xf32> to vector<8x128xf32>
    %22 = vector.broadcast %cst_13 : f32 to vector<8x128xf32>
    %23 = arith.select %19, %21, %22 : vector<8x128xi1>, vector<8x128xf32>
    %24 = arith.addf %15, %23 : vector<8x128xf32>
    %c0_14 = arith.constant 0 : index
    %c1 = arith.constant 1 : index
    %25 = vector.load %arg2[%c0_14, %c1] : memref<8x4xi32, #tpu.memory_space<vmem>>, vector<8x1xi32>
    %c0_15 = arith.constant 0 : index
    %c1_16 = arith.constant 1 : index
    %26 = vector.load %arg3[%c0_15, %c1_16] : memref<8x4xf32, #tpu.memory_space<vmem>>, vector<8x1xf32>
    %27 = vector.broadcast %25 : vector<8x1xi32> to vector<8x128xi32>
    %28 = arith.cmpi eq, %6, %27 : vector<8x128xi32>
    %cst_17 = arith.constant 0.000000e+00 : f32
    %29 = vector.shape_cast %26 : vector<8x1xf32> to vector<8x1xf32>
    %30 = vector.broadcast %29 : vector<8x1xf32> to vector<8x128xf32>
    %31 = vector.broadcast %cst_17 : f32 to vector<8x128xf32>
    %32 = arith.select %28, %30, %31 : vector<8x128xi1>, vector<8x128xf32>
    %33 = arith.addf %24, %32 : vector<8x128xf32>
    %c0_18 = arith.constant 0 : index
    %c2 = arith.constant 2 : index
    %34 = vector.load %arg2[%c0_18, %c2] : memref<8x4xi32, #tpu.memory_space<vmem>>, vector<8x1xi32>
    %c0_19 = arith.constant 0 : index
    %c2_20 = arith.constant 2 : index
    %35 = vector.load %arg3[%c0_19, %c2_20] : memref<8x4xf32, #tpu.memory_space<vmem>>, vector<8x1xf32>
    %36 = vector.broadcast %34 : vector<8x1xi32> to vector<8x128xi32>
    %37 = arith.cmpi eq, %6, %36 : vector<8x128xi32>
    %cst_21 = arith.constant 0.000000e+00 : f32
    %38 = vector.shape_cast %35 : vector<8x1xf32> to vector<8x1xf32>
    %39 = vector.broadcast %38 : vector<8x1xf32> to vector<8x128xf32>
    %40 = vector.broadcast %cst_21 : f32 to vector<8x128xf32>
    %41 = arith.select %37, %39, %40 : vector<8x128xi1>, vector<8x128xf32>
    %42 = arith.addf %33, %41 : vector<8x128xf32>
    %c0_22 = arith.constant 0 : index
    %c3 = arith.constant 3 : index
    %43 = vector.load %arg2[%c0_22, %c3] : memref<8x4xi32, #tpu.memory_space<vmem>>, vector<8x1xi32>
    %c0_23 = arith.constant 0 : index
    %c3_24 = arith.constant 3 : index
    %44 = vector.load %arg3[%c0_23, %c3_24] : memref<8x4xf32, #tpu.memory_space<vmem>>, vector<8x1xf32>
    %45 = vector.broadcast %43 : vector<8x1xi32> to vector<8x128xi32>
    %46 = arith.cmpi eq, %6, %45 : vector<8x128xi32>
    %cst_25 = arith.constant 0.000000e+00 : f32
    %47 = vector.shape_cast %44 : vector<8x1xf32> to vector<8x1xf32>
    %48 = vector.broadcast %47 : vector<8x1xf32> to vector<8x128xf32>
    %49 = vector.broadcast %cst_25 : f32 to vector<8x128xf32>
    %50 = arith.select %46, %48, %49 : vector<8x128xi1>, vector<8x128xf32>
    %51 = arith.addf %42, %50 : vector<8x128xf32>
    %52 = arith.mulf %14, %51 : vector<8x128xf32>
    %53 = arith.truncf %52 : vector<8x128xf32> to vector<8x128xbf16>
    %cst_26 = arith.constant dense<0.000000e+00> : vector<8x128xf32>
    %54 = tpu.matmul %53, %1, %cst_26 {dimension_numbers = #tpu.dot_dimension_numbers<[1], [0], [0], [1], [0, 0, 1, 1], [], []>} : vector<8x128xbf16>, vector<128x128xbf16>, vector<8x128xf32> -> vector<8x128xf32>
    %55 = arith.truncf %54 : vector<8x128xf32> to vector<8x128xbf16>
    %c0_27 = arith.constant 0 : index
    %c0_28 = arith.constant 0 : index
    %56 = vector.load %arg6[%c0_27, %c0_28] : memref<128x128xbf16, #tpu.memory_space<vmem>>, vector<128x128xbf16>
    %cst_29 = arith.constant dense<0.000000e+00> : vector<8x128xf32>
    %57 = tpu.matmul %55, %56, %cst_29 {dimension_numbers = #tpu.dot_dimension_numbers<[1], [0], [0], [1], [0, 0, 1, 1], [], []>} : vector<8x128xbf16>, vector<128x128xbf16>, vector<8x128xf32> -> vector<8x128xf32>
    %c0_30 = arith.constant 0 : index
    %c0_31 = arith.constant 0 : index
    %58 = vector.load %arg7[%c0_30, %c0_31] : memref<8x128xf32, #tpu.memory_space<vmem>>, vector<8x128xf32>
    tpu.vector_store %arg7[%c0_30, %c0_31], %57 {strides = array<i32>} : memref<8x128xf32, #tpu.memory_space<vmem>>, vector<8x128xf32>,
    return
  }
  func.func @transform_0(%arg0: i32) -> (i32, i32) {
    %c0_i32 = arith.constant 0 : i32
    %c0_i32_0 = arith.constant 0 : i32
    return %arg0, %c0_i32 : i32, i32
  }
  func.func @transform_1(%arg0: i32) -> (i32, i32) {
    %c0_i32 = arith.constant 0 : i32
    %c0_i32_0 = arith.constant 0 : i32
    return %arg0, %c0_i32 : i32, i32
  }
  func.func @transform_2(%arg0: i32) -> (i32, i32) {
    %c0_i32 = arith.constant 0 : i32
    %c0_i32_0 = arith.constant 0 : i32
    return %arg0, %c0_i32 : i32, i32
  }
  func.func @transform_3(%arg0: i32) -> (i32, i32) {
    %c0_i32 = arith.constant 0 : i32
    %c0_i32_0 = arith.constant 0 : i32
    %c0_i32_1 = arith.constant 0 : i32
    return %c0_i32, %c0_i32_0 : i32, i32
  }
  func.func @transform_4(%arg0: i32) -> (i32, i32) {
    %c0_i32 = arith.constant 0 : i32
    %c0_i32_0 = arith.constant 0 : i32
    %c0_i32_1 = arith.constant 0 : i32
    return %c0_i32, %c0_i32_0 : i32, i32
  }
  func.func @transform_5(%arg0: i32) -> (i32, i32) {
    %c0_i32 = arith.constant 0 : i32
    %c0_i32_0 = arith.constant 0 : i32
    %c0_i32_1 = arith.constant 0 : i32
    return %c0_i32, %c0_i32_0 : i32, i32
  }
  func.func @transform_6(%arg0: i32) -> (i32, i32) {
    %c0_i32 = arith.constant 0 : i32
    %c0_i32_0 = arith.constant 0 : i32
    return %arg0, %c0_i32 : i32, i32
  }
}

module attributes {stable_mosaic.version = 11 : i64} {
  func.func @_moe_reordered_kernel(%arg0: i32, %arg1: memref<8x128xbf16, #tpu.memory_space<vmem>>, %arg2: memref<8x4xi32, #tpu.memory_space<vmem>>, %arg3: memref<8x4xf32, #tpu.memory_space<vmem>>, %arg4: memref<128x128xbf16, #tpu.memory_space<vmem>>, %arg5: memref<128x128xbf16, #tpu.memory_space<vmem>>, %arg6: memref<128x128xbf16, #tpu.memory_space<vmem>>, %arg7: memref<8x128xf32, #tpu.memory_space<vmem>>) attributes {dimension_semantics = [#tpu.dimension_semantics<parallel>], iteration_bounds = array<i64: 2>, scalar_prefetch = 0 : i64, scratch_operands = 0 : i64, tpu.core_type = #tpu.core_type<tc>, window_params = [{transform_indices = @transform_0, window_bounds = array<i64: 8, 128>}, {transform_indices = @transform_1, window_bounds = array<i64: 8, 4>}, {transform_indices = @transform_2, window_bounds = array<i64: 8, 4>}, {pipeline_mode = #tpu.pipeline_mode<synchronous>, transform_indices = @transform_3, window_bounds = array<i64: 128, 128>}, {pipeline_mode = #tpu.pipeline_mode<synchronous>, transform_indices = @transform_4, window_bounds = array<i64: 128, 128>}, {pipeline_mode = #tpu.pipeline_mode<synchronous>, transform_indices = @transform_5, window_bounds = array<i64: 128, 128>}, {transform_indices = @transform_6, window_bounds = array<i64: 8, 128>}]} {
    %c0 = arith.constant 0 : index
    %c0_0 = arith.constant 0 : index
    %0 = vector.load %arg1[%c0, %c0_0] : memref<8x128xbf16, #tpu.memory_space<vmem>>, vector<8x128xbf16>
    %c0_1 = arith.constant 0 : index
    %c0_2 = arith.constant 0 : index
    %1 = vector.load %arg4[%c0_1, %c0_2] : memref<128x128xbf16, #tpu.memory_space<vmem>>, vector<128x128xbf16>
    %c0_3 = arith.constant 0 : index
    %c0_4 = arith.constant 0 : index
    %2 = vector.load %arg5[%c0_3, %c0_4] : memref<128x128xbf16, #tpu.memory_space<vmem>>, vector<128x128xbf16>
    %cst = arith.constant dense<0.000000e+00> : vector<8x128xf32>
    %3 = tpu.matmul %0, %2, %cst {dimension_numbers = #tpu.dot_dimension_numbers<[1], [0], [0], [1], [0, 0, 1, 1], [], []>} : vector<8x128xbf16>, vector<128x128xbf16>, vector<8x128xf32> -> vector<8x128xf32>
    %4 = arith.truncf %3 : vector<8x128xf32> to vector<8x128xbf16>
    %cst_5 = arith.constant dense<0.000000e+00> : vector<8x128xf32>
    %5 = tpu.matmul %4, %1, %cst_5 {dimension_numbers = #tpu.dot_dimension_numbers<[1], [1], [0], [0], [0, 0, 1, 0], [], []>} : vector<8x128xbf16>, vector<128x128xbf16>, vector<8x128xf32> -> vector<8x128xf32>
    %6 = tpu.iota {dimensions = array<i32: 1>} : vector<8x128xi32>
    %cst_6 = arith.constant 1.702000e+00 : f32
    %7 = vector.broadcast %cst_6 : f32 to vector<8x128xf32>
    %8 = arith.mulf %7, %5 : vector<8x128xf32>
    %9 = arith.negf %8 : vector<8x128xf32>
    %10 = math.exp %9 : vector<8x128xf32>
    %cst_7 = arith.constant 1.000000e+00 : f32
    %11 = vector.broadcast %cst_7 : f32 to vector<8x128xf32>
    %12 = arith.addf %11, %10 : vector<8x128xf32>
    %13 = arith.divf %11, %12 : vector<8x128xf32>
    %14 = arith.mulf %5, %13 : vector<8x128xf32>
    %cst_8 = arith.constant 0.000000e+00 : f32
    %15 = vector.broadcast %cst_8 : f32 to vector<8x128xf32>
    %c0_9 = arith.constant 0 : index
    %c0_10 = arith.constant 0 : index
    %16 = vector.load %arg2[%c0_9, %c0_10] : memref<8x4xi32, #tpu.memory_space<vmem>>, vector<8x1xi32>
    %c0_11 = arith.constant 0 : index
    %c0_12 = arith.constant 0 : index
    %17 = vector.load %arg3[%c0_11, %c0_12] : memref<8x4xf32, #tpu.memory_space<vmem>>, vector<8x1xf32>
    %18 = vector.broadcast %16 : vector<8x1xi32> to vector<8x128xi32>
    %19 = arith.cmpi eq, %6, %18 : vector<8x128xi32>
    %cst_13 = arith.constant 0.000000e+00 : f32
    %20 = vector.shape_cast %17 : vector<8x1xf32> to vector<8x1xf32>
    %21 = vector.broadcast %20 : vector<8x1xf32> to vector<8x128xf32>
    %22 = vector.broadcast %cst_13 : f32 to vector<8x128xf32>
    %23 = arith.select %19, %21, %22 : vector<8x128xi1>, vector<8x128xf32>
    %24 = arith.addf %15, %23 : vector<8x128xf32>
    %c0_14 = arith.constant 0 : index
    %c1 = arith.constant 1 : index
    %25 = vector.load %arg2[%c0_14, %c1] : memref<8x4xi32, #tpu.memory_space<vmem>>, vector<8x1xi32>
    %c0_15 = arith.constant 0 : index
    %c1_16 = arith.constant 1 : index
    %26 = vector.load %arg3[%c0_15, %c1_16] : memref<8x4xf32, #tpu.memory_space<vmem>>, vector<8x1xf32>
    %27 = vector.broadcast %25 : vector<8x1xi32> to vector<8x128xi32>
    %28 = arith.cmpi eq, %6, %27 : vector<8x128xi32>
    %cst_17 = arith.constant 0.000000e+00 : f32
    %29 = vector.shape_cast %26 : vector<8x1xf32> to vector<8x1xf32>
    %30 = vector.broadcast %29 : vector<8x1xf32> to vector<8x128xf32>
    %31 = vector.broadcast %cst_17 : f32 to vector<8x128xf32>
    %32 = arith.select %28, %30, %31 : vector<8x128xi1>, vector<8x128xf32>
    %33 = arith.addf %24, %32 : vector<8x128xf32>
    %c0_18 = arith.constant 0 : index
    %c2 = arith.constant 2 : index
    %34 = vector.load %arg2[%c0_18, %c2] : memref<8x4xi32, #tpu.memory_space<vmem>>, vector<8x1xi32>
    %c0_19 = arith.constant 0 : index
    %c2_20 = arith.constant 2 : index
    %35 = vector.load %arg3[%c0_19, %c2_20] : memref<8x4xf32, #tpu.memory_space<vmem>>, vector<8x1xf32>
    %36 = vector.broadcast %34 : vector<8x1xi32> to vector<8x128xi32>
    %37 = arith.cmpi eq, %6, %36 : vector<8x128xi32>
    %cst_21 = arith.constant 0.000000e+00 : f32
    %38 = vector.shape_cast %35 : vector<8x1xf32> to vector<8x1xf32>
    %39 = vector.broadcast %38 : vector<8x1xf32> to vector<8x128xf32>
    %40 = vector.broadcast %cst_21 : f32 to vector<8x128xf32>
    %41 = arith.select %37, %39, %40 : vector<8x128xi1>, vector<8x128xf32>
    %42 = arith.addf %33, %41 : vector<8x128xf32>
    %c0_22 = arith.constant 0 : index
    %c3 = arith.constant 3 : index
    %43 = vector.load %arg2[%c0_22, %c3] : memref<8x4xi32, #tpu.memory_space<vmem>>, vector<8x1xi32>
    %c0_23 = arith.constant 0 : index
    %c3_24 = arith.constant 3 : index
    %44 = vector.load %arg3[%c0_23, %c3_24] : memref<8x4xf32, #tpu.memory_space<vmem>>, vector<8x1xf32>
    %45 = vector.broadcast %43 : vector<8x1xi32> to vector<8x128xi32>
    %46 = arith.cmpi eq, %6, %45 : vector<8x128xi32>
    %cst_25 = arith.constant 0.000000e+00 : f32
    %47 = vector.shape_cast %44 : vector<8x1xf32> to vector<8x1xf32>
    %48 = vector.broadcast %47 : vector<8x1xf32> to vector<8x128xf32>
    %49 = vector.broadcast %cst_25 : f32 to vector<8x128xf32>
    %50 = arith.select %46, %48, %49 : vector<8x128xi1>, vector<8x128xf32>
    %51 = arith.addf %42, %50 : vector<8x128xf32>
    %52 = arith.mulf %14, %51 : vector<8x128xf32>
    %53 = arith.truncf %52 : vector<8x128xf32> to vector<8x128xbf16>
    %cst_26 = arith.constant dense<0.000000e+00> : vector<8x128xf32>
    %54 = tpu.matmul %53, %1, %cst_26 {dimension_numbers = #tpu.dot_dimension_numbers<[1], [0], [0], [1], [0, 0, 1, 1], [], []>} : vector<8x128xbf16>, vector<128x128xbf16>, vector<8x128xf32> -> vector<8x128xf32>
    %55 = arith.truncf %54 : vector<8x128xf32> to vector<8x128xbf16>
    %c0_27 = arith.constant 0 : index
    %c0_28 = arith.constant 0 : index
    %56 = vector.load %arg6[%c0_27, %c0_28] : memref<128x128xbf16, #tpu.memory_space<vmem>>, vector<128x128xbf16>
    %cst_29 = arith.constant dense<0.000000e+00> : vector<8x128xf32>
    %57 = tpu.matmul %55, %56, %cst_29 {dimension_numbers = #tpu.dot_dimension_numbers<[1], [0], [0], [1], [0, 0, 1, 1], [], []>} : vector<8x128xbf16>, vector<128x128xbf16>, vector<8x128xf32> -> vector<8x128xf32>
    %c0_30 = arith.constant 0 : index
    %c0_31 = arith.constant 0 : index
    %58 = vector.load %arg7[%c0_30, %c0_31] : memref<8x128xf32, #tpu.memory_space<vmem>>, vector<8x128xf32>
    tpu.vector_store %arg7[%c0_30, %c0_31], %57 {strides = array<i32>} : memref<8x128xf32, #tpu.memory_space<vmem>>, vector<8x128xf32>,
    return
  }
  func.func @transform_0(%arg0: i32) -> (i32, i32) {
    %c0_i32 = arith.constant 0 : i32
    %c0_i32_0 = arith.constant 0 : i32
    return %arg0, %c0_i32 : i32, i32
  }
  func.func @transform_1(%arg0: i32) -> (i32, i32) {
    %c0_i32 = arith.constant 0 : i32
    %c0_i32_0 = arith.constant 0 : i32
    return %arg0, %c0_i32 : i32, i32
  }
  func.func @transform_2(%arg0: i32) -> (i32, i32) {
    %c0_i32 = arith.constant 0 : i32
    %c0_i32_0 = arith.constant 0 : i32
    return %arg0, %c0_i32 : i32, i32
  }
  func.func @transform_3(%arg0: i32) -> (i32, i32) {
    %c0_i32 = arith.constant 0 : i32
    %c0_i32_0 = arith.constant 0 : i32
    %c0_i32_1 = arith.constant 0 : i32
    return %c0_i32, %c0_i32_0 : i32, i32
  }
  func.func @transform_4(%arg0: i32) -> (i32, i32) {
    %c0_i32 = arith.constant 0 : i32
    %c0_i32_0 = arith.constant 0 : i32
    %c0_i32_1 = arith.constant 0 : i32
    return %c0_i32, %c0_i32_0 : i32, i32
  }
  func.func @transform_5(%arg0: i32) -> (i32, i32) {
    %c0_i32 = arith.constant 0 : i32
    %c0_i32_0 = arith.constant 0 : i32
    %c0_i32_1 = arith.constant 0 : i32
    return %c0_i32, %c0_i32_0 : i32, i32
  }
  func.func @transform_6(%arg0: i32) -> (i32, i32) {
    %c0_i32 = arith.constant 0 : i32
    %c0_i32_0 = arith.constant 0 : i32
    return %arg0, %c0_i32 : i32, i32
  }
}

</mosaic_0001>

<bundles_post_ra>
// kernel: tpu_custom_call.1
= control target key start
LH: loop header
LB: loop body
LE: loop exit
PB: predicated region body
PF: predicated region fallthrough
CT: control target
= control target key end

     0   :  { %s1938_s0 = inlined_call_operand.hbm [shape: bf16[16,128], index: 0, kind: input, shape index: {}]   ;;  %s1939_s1 = inlined_call_operand.hbm [shape: s32[16,4], index: 1, kind: input, shape index: {}]   ;;  %s1940_s2 = inlined_call_operand.hbm [shape: f32[16,4], index: 2, kind: input, shape index: {}]   ;;  %s1941_s3 = inlined_call_operand.hbm [shape: bf16[128,128], index: 3, kind: input, shape index: {}]   ;;  %s1942_s4 = inlined_call_operand.hbm [shape: bf16[128,128], index: 4, kind: input, shape index: {}]   ;;  %s1943_s5 = inlined_call_operand.hbm [shape: bf16[128,128], index: 5, kind: input, shape index: {}]   ;;  %s1944_s6 = inlined_call_operand.hbm [shape: f32[16,128], index: 6, kind: output, shape index: {}]  }
   0x1   :  { %1969 = sst [smem:[#allocation24_spill]] %s1939_s1 }
   0x2   :  { %1970 = sst [smem:[#allocation25_spill]] %s1941_s3 }
   0x3   :  { %1971 = sst [smem:[#allocation26_spill]] %s1944_s6 }
   0x4   :  { %11 = vsyncpa [#allocation3], 0 }
   0x5   :  { %13 = vsyncpa [#allocation3 + $0x1], 0 }
   0x6   :  { %14 = vsyncpa [#allocation6], 0 }
   0x7   :  { %16 = vsyncpa [#allocation6 + $0x1], 0 }
   0x8   :  { %17 = vsyncpa [#allocation9], 0 }
   0x9   :  { %18 = vsyncpa [#allocation12], 0 }
   0xa   :  { %19 = vsyncpa [#allocation4], 0 }
   0xb   :  { %21 = vsyncpa [#allocation4 + $0x1], 0  ;;  %s1550_s21 = smov 0   ;;  %s1552_s22 = smov 0  }
   0xc   :  { %s1554_s23 = smov 0   ;;  %s1556_s24 = smov 0  }
   0xd LB: > { %1972 = sst [smem:[#allocation19_spill]] %s1486_s21  ;;  %s1571_s25 = sadd.s32 4294967295, %s1498_s24   ;;  %s1498_s24 = sphi %s1556_s24, %s2008_s24   ;;  %s1494_s23 = sphi %s1554_s23, %s2010_s23   ;;  %s1490_s22 = sphi %s1552_s22, %s2012_s22   ;;  %s1486_s21 = sphi %s1550_s21, %s2011_s21  }
   0xe   : > { %1973 = sst [smem:[#allocation20_spill]] %s1494_s23  ;;  %s950_s26 = sadd.s32 4294967294, %s1498_s24  }
   0xf   : > { %p47_p0 = scmp.ne.s32.totalorder %s1490_s22, %s1486_s21  ;;  %p1945_p1 = scmp.eq.s32.totalorder %s1571_s25, 0 }
  0x10   : > { %p192_p3 = scmp.eq.s32.totalorder %s950_s26, 1  ;;  %p951_p5 = scmp.ge.s32.totalorder %s1498_s24, 1 }
  0x11   : > { %p1580_p4 = por %p1945_p1, %p47_p0  ;;  %p199_p7 = scmp.lt.s32.totalorder %s1498_s24, 3 }
  0x12   : > { %p1585_p6 = por %p192_p3, %p47_p0  ;;  %s1500_s30 = smov [#allocation8]  }
  0x13   : > { %s1974_s27 = scalar_select %p1580_p4, 1, 0 }
  0x14   : > { %s1975_s28 = scalar_select %p1585_p6, 1, 0 }
  0x15   : > { %p1590_p8 = pnand %p951_p5, %p199_p7  ;;  %s211_s7 = sshll.u32 %s1500_s30, 4  ;;  %s1594_s7 = int_to_ptr.vmem [resolvable:$true] %s211_s7 }
  0x16   : > { %1976 = sst [smem:[#allocation21_spill]] %s1975_s28  ;;  %s1606_s9 = sadd.s32 1, %s1498_s24  }
  0x17   : > { %s1977_s29 = scalar_select %p1590_p8, 1, 0 }
  0x18   : > { %p1135_p9 = pneg %p1590_p8  ;;  %1979 = sst [smem:[#allocation22_spill]] %s1606_s9 }
  0x19   : > { %s34_s10 = sadd.s32 1, %s1494_s23  ;;  %s31_s11 = ssub.s32 %s1498_s24, %s1606_s9 }
  0x1a   : > { %p1601_p11 = pnand %p1135_p9, %p1945_p1  ;;  %s1980_s3 = sld [smem:[#allocation25_spill]] }
  0x1c   : > { %s1978_s8 = scalar_select %p1601_p11, 1, 0 }
  0x1d   : > { %p1619_p13 = pneg %p1601_p11 }
  0x1f   : > { %s1981_s17 = scalar_select %p1619_p13, 1, 0 }
  0x20   : > { %s1246_s14 = scalar_lea.hbm %s1980_s3, 1024 }
  0x21   : > { %p1247_p12 = scmp.ne.s32.totalorder %s1980_s3, %s1246_s14  ;;  %p1253_p5 = scmp.lt.u32.totalorder %s1246_s14, %s1980_s3 }
  0x23   : > { %p1249_p0 = pnand %p1619_p13, %p1247_p12 }
  0x25   : > { %p1250_p3 = pneg %p1249_p0 }
  0x27   : > { %p1255_p7 = pnand %p1253_p5, %p1250_p3 }
  0x29   : > { %1258 = shalt.err (!%p1255_p7)
}
  0x2a   : > { %s1259_s20 = scalar_lea.vmem %s1594_s7, 1024  ;;  %p1267_p2 = scmp.lt.s32.totalorder %s1594_s7, %s1594_s7 }
  0x2b   : > { %p1260_p9 = scmp.ne.s32.totalorder %s1594_s7, %s1259_s20  ;;  %p1268_p6 = scmp.lt.s32.totalorder %s1259_s20, %s1259_s20 }
  0x2d   : > { %p1262_p10 = pnand %p1260_p9, %p1619_p13  ;;  %p1269_p12 = por %p1268_p6, %p1267_p2 }
  0x2f   : > { %p1263_p1 = pneg %p1262_p10 }
  0x31   : > { %p1270_p0 = pnand %p1269_p12, %p1263_p1 }
  0x33   : > { %1273 = shalt.err (!%p1270_p0)
}
  0x34   : > { %s1946_s26 = smov 64   ;;  %s1948_s30 = smov 4  }
  0x35   : > { %1138 = dma.hbm_to_vmem [thread:$0]  (!%p1601_p11), %s1980_s3, 1024, %s1594_s7, [#allocation9], %s1946_s26, %s1946_s26, %s1948_s30  }
  0x36   : > { %p32_p1 = scmp.eq.s32.totalorder %s31_s11, 0  ;;  %p41_p2 = scmp.ne.s32.totalorder %s1494_s23, %s1490_s22 }
  0x37   : > { %p42_p6 = scmp.eq.s32.totalorder %s1498_s24, 0  ;;  %p1162_p10 = scmp.lt.s32.totalorder %s1498_s24, 2 }
  0x38   : > { %s1648_s14 = scalar_select %p32_p1, %s1494_s23, %s34_s10  }
  0x39   : > { %p43_p3 = por %p42_p6, %p41_p2  ;;  %p1983_p5 = scmp.eq.s32.totalorder %s1571_s25, 1 }
  0x3a   : > { %1982 = sst [smem:[#allocation23_spill]] %s1648_s14  ;;  %s1657_s16 = sand.u32 1, %s1494_s23  }
  0x3b   : > { %p1652_p7 = por %p1983_p5, %p41_p2  ;;  %s269_s18 = sand.u32 1, %s1498_s24  }
  0x3c   : > { %p1660_p9 = pnand %p1162_p10, %p43_p3  ;;  %s1950_s7 = sshll.u32 %s1657_s16, 3 }
  0x3d   : > { %s1984_s15 = scalar_select %p1652_p7, 1, 0 }
  0x3e   : > { %s1985_s19 = scalar_select %p1660_p9, 1, 0 }
  0x3f   : > { %s1951_s11 = sshll.u32 %s1498_s24, 7  ;;  %s1986_s1 = sld [smem:[#allocation24_spill]] }
  0x40   : > { %s273_s13 = scalar_lea.vmem [#allocation5], %s1950_s7  ;;  %s1677_s30 = scalar_lea.sflag [#allocation6], %s269_s18 }
  0x41   : > { %s280_s26 = sshll.u32 %s273_s13, 4  ;;  %p1683_p0 = pneg %p1660_p9  ;;  %s1675_s26 = int_to_ptr.vmem [resolvable:$true] %s280_s26 }
  0x43   : > { %s1987_s14 = scalar_select %p1683_p0, 1, 0 }
  0x45   : > { %s1671_s12 = scalar_lea.hbm %s1986_s1, %s1951_s11  ;;  %s1279_s7 = scalar_lea.hbm %s1986_s1, 256 }
  0x46   : > { %s1274_s3 = scalar_lea.hbm %s1671_s12, 128  ;;  %p1280_p6 = scmp.lt.u32.totalorder %s1671_s12, %s1986_s1 }
  0x47   : > { %p1275_p12 = scmp.ne.s32.totalorder %s1671_s12, %s1274_s3  ;;  %p1281_p10 = scmp.lt.u32.totalorder %s1279_s7, %s1274_s3 }
  0x48   : > { %p1283_p5 = scmp.lt.u32.totalorder %s1274_s3, %s1671_s12 }
  0x49   : > { %p1277_p1 = pnand %p1683_p0, %p1275_p12  ;;  %p1282_p3 = por %p1281_p10, %p1280_p6 }
  0x4b   : > { %p1278_p2 = pneg %p1277_p1  ;;  %p1284_p7 = por %p1283_p5, %p1282_p3 }
  0x4d   : > { %p1285_p4 = pnand %p1284_p7, %p1278_p2 }
  0x4f   : > { %1288 = shalt.err (!%p1285_p4)
}
  0x50   : > { %s1289_s18 = scalar_lea.vmem %s1675_s26, 128  ;;  %s1503_s10 = smov [#allocation5]  }
  0x51   : > { %p1290_p12 = scmp.ne.s32.totalorder %s1675_s26, %s1289_s18  ;;  %s1294_s20 = sshll.u32 %s1503_s10, 4  ;;  %s1295_s20 = int_to_ptr.vmem [resolvable:$false] %s1294_s20 }
  0x52   : > { %s1296_s11 = scalar_lea.vmem %s1295_s20, 256  ;;  %p1297_p11 = scmp.lt.s32.totalorder %s1675_s26, %s1295_s20 }
  0x53   : > { %p1292_p1 = pnand %p1290_p12, %p1683_p0  ;;  %p1298_p13 = scmp.lt.s32.totalorder %s1296_s11, %s1289_s18 }
  0x55   : > { %p1293_p8 = pneg %p1292_p1  ;;  %p1299_p6 = por %p1298_p13, %p1297_p11 }
  0x57   : > { %p1300_p10 = pnand %p1299_p6, %p1293_p8 }
  0x59   : > { %1303 = shalt.err (!%p1300_p10)
}
  0x5a   : > { %1151 = dma.hbm_to_vmem [thread:$0]  (!%p1660_p9), %s1671_s12, 128, %s1675_s26, %s1677_s30  }
  0x5b   : > { %s1988_s3 = sshll.u32 %s1498_s24, 7  ;;  %s1504_s1 = smov [#allocation10]  }
  0x5c   : > { %s1712_s10 = scalar_lea.hbm %s1940_s2, %s1988_s3  ;;  %s224_s20 = sshll.u32 %s1504_s1, 4  ;;  %s225_s20 = int_to_ptr.vmem [resolvable:$true] %s224_s20 }
  0x5d   : > { %s1505_s18 = smov [#allocation11]   ;;  %s1304_s28 = scalar_lea.hbm %s1942_s4, 1024 }
  0x5e   : > { %s237_s11 = sshll.u32 %s1505_s18, 4  ;;  %p1305_p4 = scmp.ne.s32.totalorder %s1942_s4, %s1304_s28  ;;  %s238_s11 = int_to_ptr.vmem [resolvable:$true] %s237_s11 }
  0x5f   : > { %p1989_p8 = scmp.ne.s32.totalorder %s1981_s17, 0  ;;  %p1311_p7 = scmp.lt.u32.totalorder %s1304_s28, %s1942_s4 }
  0x61   : > { %p1307_p11 = pnand %p1305_p4, %p1989_p8 }
  0x63   : > { %p1308_p13 = pneg %p1307_p11 }
  0x65   : > { %p1313_p2 = pnand %p1311_p7, %p1308_p13 }
  0x67   : > { %1316 = shalt.err (!%p1313_p2)
}
  0x68   : > { %s1317_s1 = scalar_lea.vmem %s225_s20, 1024  ;;  %p1325_p1 = scmp.lt.s32.totalorder %s225_s20, %s225_s20 }
  0x69   : > { %p1318_p3 = scmp.ne.s32.totalorder %s225_s20, %s1317_s1  ;;  %p1326_p6 = scmp.lt.s32.totalorder %s1317_s1, %s1317_s1 }
  0x6b   : > { %p1320_p5 = pnand %p1318_p3, %p1989_p8  ;;  %p1327_p10 = por %p1326_p6, %p1325_p1 }
  0x6d   : > { %p1321_p12 = pneg %p1320_p5 }
  0x6f   : > { %p1328_p9 = pnand %p1327_p10, %p1321_p12 }
  0x71   : > { %1331 = shalt.err (!%p1328_p9)
}
  0x72   : > { %p1990_p4 = scmp.ne.s32.totalorder %s1978_s8, 0  ;;  %s1991_s6 = smov 4  }
  0x73   : > { %s1992_s21 = smov 64   ;;  %s1332_s7 = scalar_lea.hbm %s1943_s5, 1024 }
  0x74   : > { %1141 = dma.hbm_to_vmem [thread:$0]  (!%p1990_p4), %s1942_s4, 1024, %s225_s20, [#allocation9], %s1992_s21, %s1992_s21, %s1991_s6  }
  0x75   : > { %p1333_p11 = scmp.ne.s32.totalorder %s1943_s5, %s1332_s7  ;;  %p1339_p7 = scmp.lt.u32.totalorder %s1332_s7, %s1943_s5 }
  0x77   : > { %p1335_p9 = pnand %p1333_p11, %p1989_p8 }
  0x79   : > { %p1336_p13 = pneg %p1335_p9 }
  0x7b   : > { %p1341_p2 = pnand %p1339_p7, %p1336_p13 }
  0x7d   : > { %1344 = shalt.err (!%p1341_p2)
}
  0x7e   : > { %s1345_s1 = scalar_lea.vmem %s238_s11, 1024  ;;  %p1353_p1 = scmp.lt.s32.totalorder %s238_s11, %s238_s11 }
  0x7f   : > { %p1346_p3 = scmp.ne.s32.totalorder %s238_s11, %s1345_s1  ;;  %p1354_p6 = scmp.lt.s32.totalorder %s1345_s1, %s1345_s1 }
  0x81   : > { %p1348_p5 = pnand %p1346_p3, %p1989_p8  ;;  %p1355_p10 = por %p1354_p6, %p1353_p1 }
  0x83   : > { %p1349_p12 = pneg %p1348_p5 }
  0x85   : > { %p1356_p0 = pnand %p1355_p10, %p1349_p12 }
  0x87   : > { %1359 = shalt.err (!%p1356_p0)
}
  0x88   : > { %1144 = dma.hbm_to_vmem [thread:$0]  (!%p1990_p4), %s1943_s5, 1024, %s238_s11, [#allocation12], %s1992_s21, %s1992_s21, %s1991_s6  }
  0x89   : > { %s956_s17 = sshll.u32 %s1657_s16, 2  ;;  %s957_s28 = sshll.u32 %s1498_s24, 6 }
  0x8a   : > { %s1761_s7 = scalar_lea.hbm %s1938_s0, %s957_s28  ;;  %s255_s8 = scalar_lea.vmem [#allocation2], %s956_s17 }
  0x8b   : > { %s262_s13 = sshll.u32 %s255_s8, 4  ;;  %s1993_s18 = sshll.u32 %s1657_s16, 3  ;;  %s1765_s13 = int_to_ptr.vmem [resolvable:$true] %s262_s13 }
  0x8c   : > { %s291_s26 = scalar_lea.vmem [#allocation7], %s1993_s18  ;;  %s252_s11 = scalar_lea.sflag [#allocation3], %s1657_s16 }
  0x8d   : > { %s298_s12 = sshll.u32 %s291_s26, 4  ;;  %s1360_s6 = scalar_lea.hbm %s1761_s7, 64  ;;  %s1767_s12 = int_to_ptr.vmem [resolvable:$true] %s298_s12 }
  0x8e   : > { %p1361_p0 = scmp.ne.s32.totalorder %s1761_s7, %s1360_s6  ;;  %p1994_p8 = scmp.ne.s32.totalorder %s1987_s14, 0 }
  0x8f   : > { %s1365_s20 = scalar_lea.hbm %s1938_s0, 128  ;;  %p1366_p9 = scmp.lt.u32.totalorder %s1761_s7, %s1938_s0 }
  0x90   : > { %p1363_p4 = pnand %p1361_p0, %p1994_p8  ;;  %p1367_p13 = scmp.lt.u32.totalorder %s1365_s20, %s1360_s6 }
  0x91   : > { %p1369_p2 = scmp.lt.u32.totalorder %s1360_s6, %s1761_s7 }
  0x92   : > { %p1364_p11 = pneg %p1363_p4  ;;  %p1368_p7 = por %p1367_p13, %p1366_p9 }
  0x94   : > { %p1370_p3 = por %p1369_p2, %p1368_p7 }
  0x96   : > { %p1371_p5 = pnand %p1370_p3, %p1364_p11 }
  0x98   : > { %1374 = shalt.err (!%p1371_p5)
}
  0x99   : > { %s1375_s16 = scalar_lea.vmem %s1765_s13, 64  ;;  %s1506_s28 = smov [#allocation2]  }
  0x9a   : > { %p1376_p12 = scmp.ne.s32.totalorder %s1765_s13, %s1375_s16  ;;  %s1380_s9 = sshll.u32 %s1506_s28, 4  ;;  %s1381_s9 = int_to_ptr.vmem [resolvable:$false] %s1380_s9 }
  0x9b   : > { %s1382_s3 = scalar_lea.vmem %s1381_s9, 128  ;;  %p1383_p10 = scmp.lt.s32.totalorder %s1765_s13, %s1381_s9 }
  0x9c   : > { %p1378_p1 = pnand %p1376_p12, %p1994_p8  ;;  %p1384_p0 = scmp.lt.s32.totalorder %s1382_s3, %s1375_s16 }
  0x9e   : > { %p1379_p6 = pneg %p1378_p1  ;;  %p1385_p4 = por %p1384_p0, %p1383_p10 }
  0xa0   : > { %p1386_p9 = pnand %p1385_p4, %p1379_p6 }
  0xa2   : > { %1389 = shalt.err (!%p1386_p9)
}
  0xa3   : > { %p1995_p11 = scmp.ne.s32.totalorder %s1985_s19, 0  ;;  %s1390_s8 = scalar_lea.hbm %s1712_s10, 128 }
  0xa4   : > { %p1391_p13 = scmp.ne.s32.totalorder %s1712_s10, %s1390_s8  ;;  %s1395_s6 = scalar_lea.hbm %s1940_s2, 256 }
  0xa5   : > { %1148 = dma.hbm_to_vmem [thread:$0]  (!%p1995_p11), %s1761_s7, 64, %s1765_s13, %s252_s11  }
  0xa6   : > { %p1393_p7 = pnand %p1391_p13, %p1994_p8  ;;  %p1396_p3 = scmp.lt.u32.totalorder %s1712_s10, %s1940_s2 }
  0xa7   : > { %p1397_p5 = scmp.lt.u32.totalorder %s1395_s6, %s1390_s8  ;;  %p1399_p1 = scmp.lt.u32.totalorder %s1390_s8, %s1712_s10 }
  0xa8   : > { %p1394_p2 = pneg %p1393_p7 }
  0xa9   : > { %p1398_p12 = por %p1397_p5, %p1396_p3 }
  0xab   : > { %p1400_p6 = por %p1399_p1, %p1398_p12 }
  0xad   : > { %p1401_p10 = pnand %p1400_p6, %p1394_p2 }
  0xaf   : > { %1404 = shalt.err (!%p1401_p10)
}
  0xb0   : > { %s1405_s7 = scalar_lea.vmem %s1767_s12, 128  ;;  %s1507_s13 = smov [#allocation7]  }
  0xb1   : > { %p1406_p0 = scmp.ne.s32.totalorder %s1767_s12, %s1405_s7  ;;  %s1410_s11 = sshll.u32 %s1507_s13, 4  ;;  %s1411_s11 = int_to_ptr.vmem [resolvable:$false] %s1410_s11 }
  0xb2   : > { %s1412_s20 = scalar_lea.vmem %s1411_s11, 256  ;;  %p1413_p13 = scmp.lt.s32.totalorder %s1767_s12, %s1411_s11 }
  0xb3   : > { %p1408_p4 = pnand %p1406_p0, %p1994_p8  ;;  %p1414_p7 = scmp.lt.s32.totalorder %s1412_s20, %s1405_s7 }
  0xb5   : > { %p1409_p9 = pneg %p1408_p4  ;;  %p1415_p3 = por %p1414_p7, %p1413_p13 }
  0xb7   : > { %p1416_p5 = pnand %p1415_p3, %p1409_p9 }
  0xb9   : > { %1419 = shalt.err (!%p1416_p5)
}
  0xba   : > { %1154 = dma.hbm_to_vmem [thread:$0]  (!%p1995_p11), %s1712_s10, 128, %s1767_s12, %s1677_s30  }
  0xbb   : > { %p1996_p2 = scmp.ne.s32.totalorder %s1977_s29, 0 }
  0xbc   : > { %s1816_s14 = sand.u32 (!%p1996_p2), 1, %s1490_s22   ;;  %p1997_p8 = scmp.ne.s32.totalorder (!%p1996_p2), %s1974_s27, 0 }
  0xbd   : > { %307 = sbr.rel (%p1996_p2) target bundleno = 1141 (0x475), region = 44  ;;  %s963_s23 = sshll.u32 (!%p1996_p2), %s1816_s14, 2 }
  0xbe   : > { %s310_s17 = scalar_lea.sflag (!%p1996_p2), [#allocation3], %s1816_s14  ;;  %s1820_s16 = scalar_lea.vmem (!%p1996_p2), [#allocation2], %s963_s23 }
  0xc4   : > { %1465 = dma.done.wait (%p1997_p8), %s310_s17, 64  }
  0xc5   : > { %1467 = vsyncadd (%p1997_p8), %s310_s17, 4294967232  ;;  %s318_s29 = sand.u32 1, %s1571_s25   ;;  %s1828_s30 = sshll.u32 %s1816_s14, 3 }
  0xc6   : > { %s319_s19 = scalar_lea.sflag [#allocation6], %s318_s29  ;;  %s322_s10 = scalar_lea.vmem [#allocation5], %s1828_s30 }
  0xc7   : > { %1469 = dma.done.wait (%p1997_p8), %s319_s19, 256  }
  0xc8   : > { %1471 = vsyncadd (%p1997_p8), %s319_s19, 4294967040  ;;  %s331_s12 = scalar_lea.vmem [#allocation7], %s1828_s30  ;;  %p1998_p11 = scmp.eq.s32.totalorder %s1571_s25, 0 }
  0xca   : > { %1473 = dma.done.wait (%p1998_p11), [#allocation9], 2048   ;;  %p1999_p12 = pmov %p1998_p11 }
  0xcb   : > { %p2000_p1 = pmov %p1998_p11 }
  0xcc   : > { %1475 = vsyncadd (%p1999_p12), [#allocation9], 4294965248 }
  0xcd   : > { %1477 = dma.done.wait (%p2000_p1), [#allocation12], 1024   ;;  %p2001_p6 = pmov %p2000_p1 }
  0xce   : > { %v1508_v0 = vmov 0.0   ;;  %vm1509_vm0 = vmmov 0   ;;  %v1218_v1 = vld [vmem:[#allocation10] sm:$0xff]   ;;  %v1219_v2 = vld [vmem:[#allocation10 + $0x8] sm:$0xff]   ;;  %v1220_v3 = vld [vmem:[#allocation10 + $0x10] sm:$0xff]   ;;  %v1510_v20 = vmov 0   ;;  %v593_v38 = vlaneseq }
  0xcf   : > { %1479 = vsyncadd (%p2001_p6), [#allocation12], 4294966272  ;;  %1035 = vmatprep.subr.bf16.mxu0 %v1508_v0  ;;  %1051 = vmatprep.mubr.msk.bf16.mxu0 %vm1509_vm0, %v1508_v0  ;;  %v1226_v4 = vld [vmem:[#allocation8] sm:$0xff]   ;;  %v1221_v5 = vld [vmem:[#allocation10 + $0x18] sm:$0xff]   ;;  %v1511_v21 = vmov 1   ;;  %v1512_v22 = vmov 2  }
  0xd0   : > { %1055 = vmatprep.subr.bf16.mxu1 %v1508_v0  ;;  %1071 = vmatprep.mubr.msk.bf16.mxu1 %vm1509_vm0, %v1508_v0  ;;  %v1222_v6 = vld [vmem:[#allocation10 + $0x20] sm:$0xff]   ;;  %v1227_v7 = vld [vmem:[#allocation8 + $0x8] sm:$0xff]   ;;  %v1224_v9 = vld [vmem:[#allocation10 + $0x30] sm:$0xff]   ;;  %v1513_v23 = vmov 3   ;;  %v594_v39 = vand.u32 127, %v593_v38  ;;  %s381_s27 = scalar_lea.vmem [#allocation13], %s1828_s30 }
  0xd1   : > { %1036 = vmatpush3.bf16.msra.mxu0 %v1218_v1  ;;  %1056 = vmatpush3.bf16.xpose.msra.mxu1 %v1226_v4  ;;  %v1223_v8 = vld [vmem:[#allocation10 + $0x28] sm:$0xff]   ;;  %v1228_v10 = vld [vmem:[#allocation8 + $0x10] sm:$0xff]   ;;  %v1225_v11 = vld [vmem:[#allocation10 + $0x38] sm:$0xff]   ;;  %s808_s28 = sshll.u32 %s381_s27, 4  ;;  %s996_s9 = sshll.u32 %s1571_s25, 7  ;;  %s1891_s28 = int_to_ptr.vmem [resolvable:$true] %s808_s28 }
  0xd2   : > { %1037 = vmatprep.subr.bf16.mxu0 %v1508_v0  ;;  %1057 = vmatprep.subr.bf16.mxu1 %v1508_v0  ;;  %v383_v12 = vld [vmem:[%s1820_s16] sm:$0xf]  ;;  %v1230_v14 = vld [vmem:[#allocation8 + $0x20] sm:$0xff]   ;;  %v1231_v15 = vld [vmem:[#allocation8 + $0x28] sm:$0xff]   ;;  %s2002_s18 = sld [smem:[#allocation26_spill]]  ;;  %s795_s6 = scalar_lea.sflag [#allocation4], %s1816_s14 }
  0xd3   : > { %v1229_v13 = vld [vmem:[#allocation8 + $0x18] sm:$0xff]   ;;  %v1232_v16 = vld [vmem:[#allocation8 + $0x30] sm:$0xff]   ;;  %v603_v19 = vld [vmem:[%s322_s10] sm:$0xff]  ;;  %1212 = vset.pattern.permute.xlu1 %v1510_v20  ;;  %1210 = vset.pattern.permute.xlu0 %v1510_v20  ;;  %s1420_s21 = scalar_lea.vmem %s1891_s28, 128  ;;  %p2003_p0 = scmp.ne.s32.totalorder %s1984_s15, 0 }
  0xd4   : > { %v1233_v17 = vld [vmem:[#allocation8 + $0x38] sm:$0xff]   ;;  %606 = vperm.xlu0 %1210, %v603_v19   ;;  %v1234_v57 = vld [vmem:[#allocation11] sm:$0xff]   ;;  %v1235_v59 = vld [vmem:[#allocation11 + $0x8] sm:$0xff]   ;;  %p1421_p10 = scmp.ne.s32.totalorder %s1891_s28, %s1420_s21  ;;  %s1514_s25 = smov [#allocation13]  }
  0xd5   : > { %1038 = vmatpush3.bf16.msra.mxu0 %v1219_v2  ;;  %v604_v18 = vld [vmem:[%s331_s12] sm:$0xff]  ;;  %v1238_v62 = vld [vmem:[#allocation11 + $0x20] sm:$0xff]   ;;  %v1239_v63 = vld [vmem:[#allocation11 + $0x28] sm:$0xff]   ;;  %s1424_s1 = sshll.u32 %s1514_s25, 4  ;;  %s1425_s1 = int_to_ptr.vmem [resolvable:$false] %s1424_s1 }
  0xd6   : > { %1039 = vmatprep.subr.bf16.mxu0 %v1508_v0  ;;  %611 = vperm.xlu1 %1212, %v604_v18   ;;  %v1236_v60 = vld [vmem:[#allocation11 + $0x10] sm:$0xff]   ;;  %v1237_v61 = vld [vmem:[#allocation11 + $0x18] sm:$0xff]   ;;  %p1422_p4 = pnand %p1421_p10, %p2003_p0  ;;  %s1426_s7 = scalar_lea.vmem %s1425_s1, 256 }
  0xd7   : > { %v1240_v1 = vld [vmem:[#allocation11 + $0x30] sm:$0xff]   ;;  %v1241_v2 = vld [vmem:[#allocation11 + $0x38] sm:$0xff]   ;;  %p1427_p13 = scmp.lt.s32.totalorder %s1891_s28, %s1425_s1  ;;  %p1428_p7 = scmp.lt.s32.totalorder %s1426_s7, %s1420_s21 }
  0xd8   : > { %1211 = vset.pattern.permute.xlu0 %v1511_v21  ;;  %s1896_s26 = scalar_lea.hbm %s2002_s18, %s996_s9  ;;  %p1423_p9 = pneg %p1422_p4 }
  0xd9   : > { %1040 = vmatpush3.bf16.msra.mxu0 %v1220_v3  ;;  %1058 = vmatpush3.bf16.xpose.msra.mxu1 %v1227_v7  ;;  %p1429_p3 = por %p1428_p7, %p1427_p13 }
  0xda   : > { %1041 = vmatprep.subr.bf16.mxu0 %v1508_v0  ;;  %1059 = vmatprep.subr.bf16.mxu1 %v1508_v0 }
  0xdb   : > { %1213 = vset.pattern.permute.xlu1 %v1511_v21  ;;  %617 = vperm.xlu0 %1211, %v603_v19   ;;  %p1430_p5 = pnand %p1429_p3, %p1423_p9 }
  0xdc   : > { %621 = vperm.xlu1 %1213, %v604_v18  }
  0xdd   : > { %1042 = vmatpush3.bf16.msra.mxu0 %v1221_v5 }
  0xde   : > { %1043 = vmatprep.subr.bf16.mxu0 %v1508_v0 }
  0xdf   : > { %1215 = vset.pattern.permute.xlu0 %v1512_v22 }
  0xe0   : > { %1214 = vset.pattern.permute.xlu1 %v1512_v22  ;;  %631 = vperm.xlu0 %1215, %v604_v18  }
  0xe1   : > { %1044 = vmatpush3.bf16.msra.mxu0 %v1222_v6  ;;  %1060 = vmatpush3.bf16.xpose.msra.mxu1 %v1228_v10 }
  0xe2   : > { %1045 = vmatprep.subr.bf16.mxu0 %v1508_v0  ;;  %1061 = vmatprep.subr.bf16.mxu1 %v1508_v0 }
  0xe3   : > { %627 = vperm.xlu1 %1214, %v603_v19  }
  0xe4   : > { %1217 = vset.pattern.permute.xlu0 %v1513_v23 }
  0xe5   : > { %1046 = vmatpush3.bf16.msra.mxu0 %v1223_v8 }
  0xe6   : > { %1047 = vmatprep.subr.bf16.mxu0 %v1508_v0 }
  0xe7   : > { %1216 = vset.pattern.permute.xlu1 %v1513_v23 }
  0xe8   : > { %637 = vperm.xlu1 %1216, %v603_v19  }
  0xe9   : > { %1048 = vmatpush3.bf16.msra.mxu0 %v1224_v9  ;;  %1062 = vmatpush3.bf16.xpose.msra.mxu1 %v1229_v13 }
  0xea   : > { %1049 = vmatprep.subr.bf16.mxu0 %v1508_v0  ;;  %1063 = vmatprep.subr.bf16.mxu1 %v1508_v0 }
  0xec   : > { %641 = vperm.xlu1 %1216, %v604_v18  }
  0xed   : > { %1050 = vmatpush3.bf16.msra.mxu0 %v1225_v11 }
  0xee   : > { %1075 = vmatprep.subr.bf16.mxu0 %v1508_v0 }
  0xf0   : > { %1052 = vmatmul.mubr.bf16.vlgmr.msra.gmra.mrb[0].mxu0 %v383_v12 }
  0xf1   : > { %1076 = vmatpush3.bf16.msra.mxu0 %v1226_v4  ;;  %1091 = vmatprep.mubr.msk.bf16.mxu0 %vm1509_vm0, %v1508_v0 }
  0xf2   : > { %1077 = vmatprep.subr.bf16.mxu0 %v1508_v0  ;;  %1064 = vmatpush3.bf16.xpose.msra.mxu1 %v1230_v14 }
  0xf3   : > { %1065 = vmatprep.subr.bf16.mxu1 %v1508_v0 }
  0xf5   : > { %1078 = vmatpush3.bf16.msra.mxu0 %v1227_v7 }
  0xf6   : > { %1079 = vmatprep.subr.bf16.mxu0 %v1508_v0 }
  0xf9   : > { %1080 = vmatpush3.bf16.msra.mxu0 %v1228_v10 }
  0xfa   : > { %1081 = vmatprep.subr.bf16.mxu0 %v1508_v0  ;;  %1066 = vmatpush3.bf16.xpose.msra.mxu1 %v1231_v15 }
  0xfb   : > { %1067 = vmatprep.subr.bf16.mxu1 %v1508_v0 }
  0xfd   : > { %1082 = vmatpush3.bf16.msra.mxu0 %v1229_v13 }
  0xfe   : > { %1083 = vmatprep.subr.bf16.mxu0 %v1508_v0 }
 0x101   : > { %1084 = vmatpush3.bf16.msra.mxu0 %v1230_v14 }
 0x102   : > { %1085 = vmatprep.subr.bf16.mxu0 %v1508_v0  ;;  %1068 = vmatpush3.bf16.xpose.msra.mxu1 %v1232_v16 }
 0x103   : > { %1069 = vmatprep.subr.bf16.mxu1 %v1508_v0 }
 0x105   : > { %1086 = vmatpush3.bf16.msra.mxu0 %v1231_v15 }
 0x106   : > { %1087 = vmatprep.subr.bf16.mxu0 %v1508_v0 }
 0x109   : > { %1088 = vmatpush3.bf16.msra.mxu0 %v1232_v16 }
 0x10a   : > { %1089 = vmatprep.subr.bf16.mxu0 %v1508_v0  ;;  %1070 = vmatpush3.bf16.xpose.msra.mxu1 %v1233_v17 }
 0x10d   : > { %1090 = vmatpush3.bf16.msra.mxu0 %v1233_v17 }
 0x10e   : > { %1095 = vmatprep.subr.bf16.mxu0 %v1508_v0 }
 0x153   : > { %v607_v37 = vpop.permute.xlu0 %606 }
 0x154   : > { %vm608_vm1 = vcmp.eq.s32.totalorder %v594_v39, %v607_v37 }
 0x155   : > { %v612_v29 = vpop.permute.xlu1 %611 }
 0x156   : > { %v614_v45 = vsel %vm608_vm1, %v612_v29, 0.0 }
 0x15a   : > { %v618_v41 = vpop.permute.xlu0 %617 }
 0x15b   : > { %v622_v36 = vpop.permute.xlu1 %621  ;;  %vm619_vm2 = vcmp.eq.s32.totalorder %v594_v39, %v618_v41 }
 0x15c   : > { %v624_v46 = vsel %vm619_vm2, %v622_v36, 0.0 }
 0x15d   : > { %v625_v48 = vadd.f32 %v624_v46, %v614_v45 }
 0x15f   : > { %v632_v47 = vpop.permute.xlu0 %631 }
 0x162   : > { %v628_v40 = vpop.permute.xlu1 %627 }
 0x163   : > { %vm629_vm3 = vcmp.eq.s32.totalorder %v594_v39, %v628_v40 }
 0x164   : > { %v634_v49 = vsel %vm629_vm3, %v632_v47, 0.0 }
 0x165   : > { %v635_v51 = vadd.f32 %v634_v49, %v625_v48 }
 0x167   : > { %v638_v44 = vpop.permute.xlu1 %637 }
 0x168   : > { %vm639_vm4 = vcmp.eq.s32.totalorder %v594_v39, %v638_v44 }
 0x16b   : > { %v642_v50 = vpop.permute.xlu1 %641 }
 0x16c   : > { %v644_v52 = vsel %vm639_vm4, %v642_v50, 0.0 }
 0x16d   : > { %v645_v55 = vadd.f32 %v644_v52, %v635_v51 }
 0x1c3   : > { %v498_v24 = vpop.f32.mrb[0].mxu0 }
 0x1c4   : > { %v504_v25 = vpack.c.bf16 %v498_v24, %v498_v24  ;;  %v1053_v26 = vpop.f32.mrb[1].mxu0 }
 0x1c5   : > { %v501_v27 = vpop.f32.mrb[2].mxu0 }
 0x1c6   : > { %v1054_v28 = vpop.f32.mrb[3].mxu0  ;;  %1072 = vmatmul.mubr.bf16.vlgmr.msra.gmra.mrb[0].mxu1 %v504_v25 }
 0x299   : > { %v587_v30 = vpop.f32.mrb[0].mxu1 }
 0x29a   : > { %v986_v31 = vmul.f32 -1.702, %v587_v30  ;;  %v1073_v32 = vpop.f32.mrb[1].mxu1 }
 0x29b   : > { %v590_v33 = vpop.f32.mrb[2].mxu1 }
 0x29c   : > { %v597_v34 = vmul.f32 1.442695, %v986_v31  ;;  %v1074_v35 = vpop.f32.mrb[3].mxu1 }
 0x29e   : > { %1242 = vpow2.f32 %v597_v34 }
 0x2a8   : > { %v1243_v42 = vpop.eup %1242 }
 0x2a9   : > { %v599_v43 = vadd.f32 1.0, %v1243_v42 }
 0x2ab   : > { %1244 = vrcp.f32 %v599_v43 }
 0x2b5   : > { %v1245_v53 = vpop.eup %1244 }
 0x2b6   : > { %v602_v54 = vmul.f32 %v1245_v53, %v587_v30 }
 0x2b8   : > { %v646_v56 = vmul.f32 %v645_v55, %v602_v54 }
 0x2ba   : > { %v647_v58 = vpack.c.bf16 %v646_v56, %v646_v56 }
 0x2bc   : > { %1092 = vmatmul.mubr.bf16.vlgmr.msra.gmra.mrb[4].mxu0 %v647_v58 }
 0x2bd   : > { %1096 = vmatpush3.bf16.msra.mxu0 %v1234_v57  ;;  %1111 = vmatprep.mubr.msk.bf16.mxu0 %vm1509_vm0, %v1508_v0 }
 0x2be   : > { %1097 = vmatprep.subr.bf16.mxu0 %v1508_v0 }
 0x2c1   : > { %1098 = vmatpush3.bf16.msra.mxu0 %v1235_v59 }
 0x2c2   : > { %1099 = vmatprep.subr.bf16.mxu0 %v1508_v0 }
 0x2c5   : > { %1100 = vmatpush3.bf16.msra.mxu0 %v1236_v60 }
 0x2c6   : > { %1101 = vmatprep.subr.bf16.mxu0 %v1508_v0 }
 0x2c9   : > { %1102 = vmatpush3.bf16.msra.mxu0 %v1237_v61 }
 0x2ca   : > { %1103 = vmatprep.subr.bf16.mxu0 %v1508_v0 }
 0x2cd   : > { %1104 = vmatpush3.bf16.msra.mxu0 %v1238_v62 }
 0x2ce   : > { %1105 = vmatprep.subr.bf16.mxu0 %v1508_v0 }
 0x2d1   : > { %1106 = vmatpush3.bf16.msra.mxu0 %v1239_v63 }
 0x2d2   : > { %1107 = vmatprep.subr.bf16.mxu0 %v1508_v0 }
 0x2d5   : > { %1108 = vmatpush3.bf16.msra.mxu0 %v1240_v1 }
 0x2d6   : > { %1109 = vmatprep.subr.bf16.mxu0 %v1508_v0 }
 0x2d9   : > { %1110 = vmatpush3.bf16.msra.mxu0 %v1241_v2 }
 0x38f   : > { %v682_v3 = vpop.f32.mrb[4].mxu0 }
 0x390   : > { %v688_v4 = vpack.c.bf16 %v682_v3, %v682_v3  ;;  %v1093_v5 = vpop.f32.mrb[5].mxu0 }
 0x391   : > { %v685_v6 = vpop.f32.mrb[6].mxu0 }
 0x392   : > { %v1094_v7 = vpop.f32.mrb[7].mxu0  ;;  %1112 = vmatmul.mubr.bf16.vlgmr.msra.gmra.mrb[8].mxu0 %v688_v4 }
 0x465   : > { %v787_v0 = vpop.f32.mrb[8].mxu0 }
 0x466   : > { %793 = vst [vmem:[%s381_s27] sm:$0xff] %v787_v0  ;;  %v1113_v8 = vpop.f32.mrb[9].mxu0 }
 0x467   : > { %v790_v9 = vpop.f32.mrb[10].mxu0 }
 0x468   : > { %1433 = shalt.err (!%p1430_p5)
}
 0x469   : > { %s1434_s13 = scalar_lea.hbm %s1896_s26, 128  ;;  %s1438_s14 = scalar_lea.hbm %s2002_s18, 256 }
 0x46a   : > { %p1435_p2 = scmp.ne.s32.totalorder %s1896_s26, %s1434_s13  ;;  %p1439_p12 = scmp.lt.u32.totalorder %s1896_s26, %s2002_s18 }
 0x46b   : > { %p1440_p1 = scmp.lt.u32.totalorder %s1438_s14, %s1434_s13  ;;  %p1442_p10 = scmp.lt.u32.totalorder %s1434_s13, %s1896_s26 }
 0x46c   : > { %p1436_p8 = pnand %p1435_p2, %p2003_p0 }
 0x46d   : > { %p1441_p6 = por %p1440_p1, %p1439_p12 }
 0x46e   : > { %p1437_p11 = pneg %p1436_p8 }
 0x46f   : > { %p1443_p4 = por %p1442_p10, %p1441_p6 }
 0x471   : > { %p1444_p9 = pnand %p1443_p4, %p1437_p11 }
 0x473   : > { %1447 = shalt.err (!%p1444_p9)
}
 0x474   : > { %1133 = dma.vmem_to_hbm [thread:$0]  (%p2003_p0), %s1891_s28, 128, %s1896_s26, %s795_s6   ;;  %v1114_v10 = vpop.f32.mrb[11].mxu0 }
 0x475 PF: > { %s2004_s16 = sld [smem:[#allocation19_spill]]  ;;  %s2005_s29 = sld [smem:[#allocation21_spill]] }
 0x476   : > { %p2007_p7 = scmp.ge.s32.totalorder %s1498_s24, 2 }
 0x47b   : > { %s820_s30 = sand.u32 1, %s2004_s16   ;;  %p2006_p13 = scmp.ne.s32.totalorder %s2005_s29, 0 }
 0x47c   : > { %s821_s19 = scalar_lea.sflag [#allocation4], %s820_s30 }
 0x47d   : > { %p1156_p3 = pnand %p2007_p7, %p2006_p13 }
 0x47f   : > { %1481 = dma.done.wait (!%p1156_p3), %s821_s19, 128  }
 0x480   : > { %1483 = vsyncadd (!%p1156_p3), %s821_s19, 4294967168  ;;  %s2008_s24 = sld [smem:[#allocation22_spill]]  ;;  %s2009_s10 = sld [smem:[#allocation20_spill]] }
 0x481   : > { %s2010_s23 = sld [smem:[#allocation23_spill]]  ;;  %s2011_s21 = smov %s1490_s22 }
 0x486   : > { %p24_p5 = scmp.ge.s32.totalorder %s2008_s24, 4   ;;  %s2012_s22 = smov %s2009_s10 }
 0x488   :  { %26 = sbr.rel (!%p24_p5) target bundleno = 13 (0xd), region = 125 }
 0x48f   :  { %826 = vsyncpa [#allocation3], 1 }
 0x490   :  { %828 = vsyncpa [#allocation3 + $0x1], 1 }
 0x491   :  { %829 = vsyncpa [#allocation6], 1 }
 0x492   :  { %831 = vsyncpa [#allocation6 + $0x1], 1 }
 0x493   :  { %832 = vsyncpa [#allocation9], 1 }
 0x494   :  { %833 = vsyncpa [#allocation12], 1 }
 0x495   :  { %834 = vsyncpa [#allocation4], 1 }
 0x496   :  { %836 = vsyncpa [#allocation4 + $0x1], 1 }

// kernel: tpu_custom_call.1
= control target key start
LH: loop header
LB: loop body
LE: loop exit
PB: predicated region body
PF: predicated region fallthrough
CT: control target
= control target key end

     0   :  { %s1938_s0 = inlined_call_operand.hbm [shape: bf16[16,128], index: 0, kind: input, shape index: {}]   ;;  %s1939_s1 = inlined_call_operand.hbm [shape: s32[16,4], index: 1, kind: input, shape index: {}]   ;;  %s1940_s2 = inlined_call_operand.hbm [shape: f32[16,4], index: 2, kind: input, shape index: {}]   ;;  %s1941_s3 = inlined_call_operand.hbm [shape: bf16[128,128], index: 3, kind: input, shape index: {}]   ;;  %s1942_s4 = inlined_call_operand.hbm [shape: bf16[128,128], index: 4, kind: input, shape index: {}]   ;;  %s1943_s5 = inlined_call_operand.hbm [shape: bf16[128,128], index: 5, kind: input, shape index: {}]   ;;  %s1944_s6 = inlined_call_operand.hbm [shape: f32[16,128], index: 6, kind: output, shape index: {}]  }
   0x1   :  { %1969 = sst [smem:[#allocation24_spill]] %s1939_s1 }
   0x2   :  { %1970 = sst [smem:[#allocation25_spill]] %s1941_s3 }
   0x3   :  { %1971 = sst [smem:[#allocation26_spill]] %s1944_s6 }
   0x4   :  { %11 = vsyncpa [#allocation3], 0 }
   0x5   :  { %13 = vsyncpa [#allocation3 + $0x1], 0 }
   0x6   :  { %14 = vsyncpa [#allocation6], 0 }
   0x7   :  { %16 = vsyncpa [#allocation6 + $0x1], 0 }
   0x8   :  { %17 = vsyncpa [#allocation9], 0 }
   0x9   :  { %18 = vsyncpa [#allocation12], 0 }
   0xa   :  { %19 = vsyncpa [#allocation4], 0 }
   0xb   :  { %21 = vsyncpa [#allocation4 + $0x1], 0  ;;  %s1550_s21 = smov 0   ;;  %s1552_s22 = smov 0  }
   0xc   :  { %s1554_s23 = smov 0   ;;  %s1556_s24 = smov 0  }
   0xd LB: > { %1972 = sst [smem:[#allocation19_spill]] %s1486_s21  ;;  %s1571_s25 = sadd.s32 4294967295, %s1498_s24   ;;  %s1498_s24 = sphi %s1556_s24, %s2008_s24   ;;  %s1494_s23 = sphi %s1554_s23, %s2010_s23   ;;  %s1490_s22 = sphi %s1552_s22, %s2012_s22   ;;  %s1486_s21 = sphi %s1550_s21, %s2011_s21  }
   0xe   : > { %1973 = sst [smem:[#allocation20_spill]] %s1494_s23  ;;  %s950_s26 = sadd.s32 4294967294, %s1498_s24  }
   0xf   : > { %p47_p0 = scmp.ne.s32.totalorder %s1490_s22, %s1486_s21  ;;  %p1945_p1 = scmp.eq.s32.totalorder %s1571_s25, 0 }
  0x10   : > { %p192_p3 = scmp.eq.s32.totalorder %s950_s26, 1  ;;  %p951_p5 = scmp.ge.s32.totalorder %s1498_s24, 1 }
  0x11   : > { %p1580_p4 = por %p1945_p1, %p47_p0  ;;  %p199_p7 = scmp.lt.s32.totalorder %s1498_s24, 3 }
  0x12   : > { %p1585_p6 = por %p192_p3, %p47_p0  ;;  %s1500_s30 = smov [#allocation8]  }
  0x13   : > { %s1974_s27 = scalar_select %p1580_p4, 1, 0 }
  0x14   : > { %s1975_s28 = scalar_select %p1585_p6, 1, 0 }
  0x15   : > { %p1590_p8 = pnand %p951_p5, %p199_p7  ;;  %s211_s7 = sshll.u32 %s1500_s30, 4  ;;  %s1594_s7 = int_to_ptr.vmem [resolvable:$true] %s211_s7 }
  0x16   : > { %1976 = sst [smem:[#allocation21_spill]] %s1975_s28  ;;  %s1606_s9 = sadd.s32 1, %s1498_s24  }
  0x17   : > { %s1977_s29 = scalar_select %p1590_p8, 1, 0 }
  0x18   : > { %p1135_p9 = pneg %p1590_p8  ;;  %1979 = sst [smem:[#allocation22_spill]] %s1606_s9 }
  0x19   : > { %s34_s10 = sadd.s32 1, %s1494_s23  ;;  %s31_s11 = ssub.s32 %s1498_s24, %s1606_s9 }
  0x1a   : > { %p1601_p11 = pnand %p1135_p9, %p1945_p1  ;;  %s1980_s3 = sld [smem:[#allocation25_spill]] }
  0x1c   : > { %s1978_s8 = scalar_select %p1601_p11, 1, 0 }
  0x1d   : > { %p1619_p13 = pneg %p1601_p11 }
  0x1f   : > { %s1981_s17 = scalar_select %p1619_p13, 1, 0 }
  0x20   : > { %s1246_s14 = scalar_lea.hbm %s1980_s3, 1024 }
  0x21   : > { %p1247_p12 = scmp.ne.s32.totalorder %s1980_s3, %s1246_s14  ;;  %p1253_p5 = scmp.lt.u32.totalorder %s1246_s14, %s1980_s3 }
  0x23   : > { %p1249_p0 = pnand %p1619_p13, %p1247_p12 }
  0x25   : > { %p1250_p3 = pneg %p1249_p0 }
  0x27   : > { %p1255_p7 = pnand %p1253_p5, %p1250_p3 }
  0x29   : > { %1258 = shalt.err (!%p1255_p7)
}
  0x2a   : > { %s1259_s20 = scalar_lea.vmem %s1594_s7, 1024  ;;  %p1267_p2 = scmp.lt.s32.totalorder %s1594_s7, %s1594_s7 }
  0x2b   : > { %p1260_p9 = scmp.ne.s32.totalorder %s1594_s7, %s1259_s20  ;;  %p1268_p6 = scmp.lt.s32.totalorder %s1259_s20, %s1259_s20 }
  0x2d   : > { %p1262_p10 = pnand %p1260_p9, %p1619_p13  ;;  %p1269_p12 = por %p1268_p6, %p1267_p2 }
  0x2f   : > { %p1263_p1 = pneg %p1262_p10 }
  0x31   : > { %p1270_p0 = pnand %p1269_p12, %p1263_p1 }
  0x33   : > { %1273 = shalt.err (!%p1270_p0)
}
  0x34   : > { %s1946_s26 = smov 64   ;;  %s1948_s30 = smov 4  }
  0x35   : > { %1138 = dma.hbm_to_vmem [thread:$0]  (!%p1601_p11), %s1980_s3, 1024, %s1594_s7, [#allocation9], %s1946_s26, %s1946_s26, %s1948_s30  }
  0x36   : > { %p32_p1 = scmp.eq.s32.totalorder %s31_s11, 0  ;;  %p41_p2 = scmp.ne.s32.totalorder %s1494_s23, %s1490_s22 }
  0x37   : > { %p42_p6 = scmp.eq.s32.totalorder %s1498_s24, 0  ;;  %p1162_p10 = scmp.lt.s32.totalorder %s1498_s24, 2 }
  0x38   : > { %s1648_s14 = scalar_select %p32_p1, %s1494_s23, %s34_s10  }
  0x39   : > { %p43_p3 = por %p42_p6, %p41_p2  ;;  %p1983_p5 = scmp.eq.s32.totalorder %s1571_s25, 1 }
  0x3a   : > { %1982 = sst [smem:[#allocation23_spill]] %s1648_s14  ;;  %s1657_s16 = sand.u32 1, %s1494_s23  }
  0x3b   : > { %p1652_p7 = por %p1983_p5, %p41_p2  ;;  %s269_s18 = sand.u32 1, %s1498_s24  }
  0x3c   : > { %p1660_p9 = pnand %p1162_p10, %p43_p3  ;;  %s1950_s7 = sshll.u32 %s1657_s16, 3 }
  0x3d   : > { %s1984_s15 = scalar_select %p1652_p7, 1, 0 }
  0x3e   : > { %s1985_s19 = scalar_select %p1660_p9, 1, 0 }
  0x3f   : > { %s1951_s11 = sshll.u32 %s1498_s24, 7  ;;  %s1986_s1 = sld [smem:[#allocation24_spill]] }
  0x40   : > { %s273_s13 = scalar_lea.vmem [#allocation5], %s1950_s7  ;;  %s1677_s30 = scalar_lea.sflag [#allocation6], %s269_s18 }
  0x41   : > { %s280_s26 = sshll.u32 %s273_s13, 4  ;;  %p1683_p0 = pneg %p1660_p9  ;;  %s1675_s26 = int_to_ptr.vmem [resolvable:$true] %s280_s26 }
  0x43   : > { %s1987_s14 = scalar_select %p1683_p0, 1, 0 }
  0x45   : > { %s1671_s12 = scalar_lea.hbm %s1986_s1, %s1951_s11  ;;  %s1279_s7 = scalar_lea.hbm %s1986_s1, 256 }
  0x46   : > { %s1274_s3 = scalar_lea.hbm %s1671_s12, 128  ;;  %p1280_p6 = scmp.lt.u32.totalorder %s1671_s12, %s1986_s1 }
  0x47   : > { %p1275_p12 = scmp.ne.s32.totalorder %s1671_s12, %s1274_s3  ;;  %p1281_p10 = scmp.lt.u32.totalorder %s1279_s7, %s1274_s3 }
  0x48   : > { %p1283_p5 = scmp.lt.u32.totalorder %s1274_s3, %s1671_s12 }
  0x49   : > { %p1277_p1 = pnand %p1683_p0, %p1275_p12  ;;  %p1282_p3 = por %p1281_p10, %p1280_p6 }
  0x4b   : > { %p1278_p2 = pneg %p1277_p1  ;;  %p1284_p7 = por %p1283_p5, %p1282_p3 }
  0x4d   : > { %p1285_p4 = pnand %p1284_p7, %p1278_p2 }
  0x4f   : > { %1288 = shalt.err (!%p1285_p4)
}
  0x50   : > { %s1289_s18 = scalar_lea.vmem %s1675_s26, 128  ;;  %s1503_s10 = smov [#allocation5]  }
  0x51   : > { %p1290_p12 = scmp.ne.s32.totalorder %s1675_s26, %s1289_s18  ;;  %s1294_s20 = sshll.u32 %s1503_s10, 4  ;;  %s1295_s20 = int_to_ptr.vmem [resolvable:$false] %s1294_s20 }
  0x52   : > { %s1296_s11 = scalar_lea.vmem %s1295_s20, 256  ;;  %p1297_p11 = scmp.lt.s32.totalorder %s1675_s26, %s1295_s20 }
  0x53   : > { %p1292_p1 = pnand %p1290_p12, %p1683_p0  ;;  %p1298_p13 = scmp.lt.s32.totalorder %s1296_s11, %s1289_s18 }
  0x55   : > { %p1293_p8 = pneg %p1292_p1  ;;  %p1299_p6 = por %p1298_p13, %p1297_p11 }
  0x57   : > { %p1300_p10 = pnand %p1299_p6, %p1293_p8 }
  0x59   : > { %1303 = shalt.err (!%p1300_p10)
}
  0x5a   : > { %1151 = dma.hbm_to_vmem [thread:$0]  (!%p1660_p9), %s1671_s12, 128, %s1675_s26, %s1677_s30  }
  0x5b   : > { %s1988_s3 = sshll.u32 %s1498_s24, 7  ;;  %s1504_s1 = smov [#allocation10]  }
  0x5c   : > { %s1712_s10 = scalar_lea.hbm %s1940_s2, %s1988_s3  ;;  %s224_s20 = sshll.u32 %s1504_s1, 4  ;;  %s225_s20 = int_to_ptr.vmem [resolvable:$true] %s224_s20 }
  0x5d   : > { %s1505_s18 = smov [#allocation11]   ;;  %s1304_s28 = scalar_lea.hbm %s1942_s4, 1024 }
  0x5e   : > { %s237_s11 = sshll.u32 %s1505_s18, 4  ;;  %p1305_p4 = scmp.ne.s32.totalorder %s1942_s4, %s1304_s28  ;;  %s238_s11 = int_to_ptr.vmem [resolvable:$true] %s237_s11 }
  0x5f   : > { %p1989_p8 = scmp.ne.s32.totalorder %s1981_s17, 0  ;;  %p1311_p7 = scmp.lt.u32.totalorder %s1304_s28, %s1942_s4 }
  0x61   : > { %p1307_p11 = pnand %p1305_p4, %p1989_p8 }
  0x63   : > { %p1308_p13 = pneg %p1307_p11 }
  0x65   : > { %p1313_p2 = pnand %p1311_p7, %p1308_p13 }
  0x67   : > { %1316 = shalt.err (!%p1313_p2)
}
  0x68   : > { %s1317_s1 = scalar_lea.vmem %s225_s20, 1024  ;;  %p1325_p1 = scmp.lt.s32.totalorder %s225_s20, %s225_s20 }
  0x69   : > { %p1318_p3 = scmp.ne.s32.totalorder %s225_s20, %s1317_s1  ;;  %p1326_p6 = scmp.lt.s32.totalorder %s1317_s1, %s1317_s1 }
  0x6b   : > { %p1320_p5 = pnand %p1318_p3, %p1989_p8  ;;  %p1327_p10 = por %p1326_p6, %p1325_p1 }
  0x6d   : > { %p1321_p12 = pneg %p1320_p5 }
  0x6f   : > { %p1328_p9 = pnand %p1327_p10, %p1321_p12 }
  0x71   : > { %1331 = shalt.err (!%p1328_p9)
}
  0x72   : > { %p1990_p4 = scmp.ne.s32.totalorder %s1978_s8, 0  ;;  %s1991_s6 = smov 4  }
  0x73   : > { %s1992_s21 = smov 64   ;;  %s1332_s7 = scalar_lea.hbm %s1943_s5, 1024 }
  0x74   : > { %1141 = dma.hbm_to_vmem [thread:$0]  (!%p1990_p4), %s1942_s4, 1024, %s225_s20, [#allocation9], %s1992_s21, %s1992_s21, %s1991_s6  }
  0x75   : > { %p1333_p11 = scmp.ne.s32.totalorder %s1943_s5, %s1332_s7  ;;  %p1339_p7 = scmp.lt.u32.totalorder %s1332_s7, %s1943_s5 }
  0x77   : > { %p1335_p9 = pnand %p1333_p11, %p1989_p8 }
  0x79   : > { %p1336_p13 = pneg %p1335_p9 }
  0x7b   : > { %p1341_p2 = pnand %p1339_p7, %p1336_p13 }
  0x7d   : > { %1344 = shalt.err (!%p1341_p2)
}
  0x7e   : > { %s1345_s1 = scalar_lea.vmem %s238_s11, 1024  ;;  %p1353_p1 = scmp.lt.s32.totalorder %s238_s11, %s238_s11 }
  0x7f   : > { %p1346_p3 = scmp.ne.s32.totalorder %s238_s11, %s1345_s1  ;;  %p1354_p6 = scmp.lt.s32.totalorder %s1345_s1, %s1345_s1 }
  0x81   : > { %p1348_p5 = pnand %p1346_p3, %p1989_p8  ;;  %p1355_p10 = por %p1354_p6, %p1353_p1 }
  0x83   : > { %p1349_p12 = pneg %p1348_p5 }
  0x85   : > { %p1356_p0 = pnand %p1355_p10, %p1349_p12 }
  0x87   : > { %1359 = shalt.err (!%p1356_p0)
}
  0x88   : > { %1144 = dma.hbm_to_vmem [thread:$0]  (!%p1990_p4), %s1943_s5, 1024, %s238_s11, [#allocation12], %s1992_s21, %s1992_s21, %s1991_s6  }
  0x89   : > { %s956_s17 = sshll.u32 %s1657_s16, 2  ;;  %s957_s28 = sshll.u32 %s1498_s24, 6 }
  0x8a   : > { %s1761_s7 = scalar_lea.hbm %s1938_s0, %s957_s28  ;;  %s255_s8 = scalar_lea.vmem [#allocation2], %s956_s17 }
  0x8b   : > { %s262_s13 = sshll.u32 %s255_s8, 4  ;;  %s1993_s18 = sshll.u32 %s1657_s16, 3  ;;  %s1765_s13 = int_to_ptr.vmem [resolvable:$true] %s262_s13 }
  0x8c   : > { %s291_s26 = scalar_lea.vmem [#allocation7], %s1993_s18  ;;  %s252_s11 = scalar_lea.sflag [#allocation3], %s1657_s16 }
  0x8d   : > { %s298_s12 = sshll.u32 %s291_s26, 4  ;;  %s1360_s6 = scalar_lea.hbm %s1761_s7, 64  ;;  %s1767_s12 = int_to_ptr.vmem [resolvable:$true] %s298_s12 }
  0x8e   : > { %p1361_p0 = scmp.ne.s32.totalorder %s1761_s7, %s1360_s6  ;;  %p1994_p8 = scmp.ne.s32.totalorder %s1987_s14, 0 }
  0x8f   : > { %s1365_s20 = scalar_lea.hbm %s1938_s0, 128  ;;  %p1366_p9 = scmp.lt.u32.totalorder %s1761_s7, %s1938_s0 }
  0x90   : > { %p1363_p4 = pnand %p1361_p0, %p1994_p8  ;;  %p1367_p13 = scmp.lt.u32.totalorder %s1365_s20, %s1360_s6 }
  0x91   : > { %p1369_p2 = scmp.lt.u32.totalorder %s1360_s6, %s1761_s7 }
  0x92   : > { %p1364_p11 = pneg %p1363_p4  ;;  %p1368_p7 = por %p1367_p13, %p1366_p9 }
  0x94   : > { %p1370_p3 = por %p1369_p2, %p1368_p7 }
  0x96   : > { %p1371_p5 = pnand %p1370_p3, %p1364_p11 }
  0x98   : > { %1374 = shalt.err (!%p1371_p5)
}
  0x99   : > { %s1375_s16 = scalar_lea.vmem %s1765_s13, 64  ;;  %s1506_s28 = smov [#allocation2]  }
  0x9a   : > { %p1376_p12 = scmp.ne.s32.totalorder %s1765_s13, %s1375_s16  ;;  %s1380_s9 = sshll.u32 %s1506_s28, 4  ;;  %s1381_s9 = int_to_ptr.vmem [resolvable:$false] %s1380_s9 }
  0x9b   : > { %s1382_s3 = scalar_lea.vmem %s1381_s9, 128  ;;  %p1383_p10 = scmp.lt.s32.totalorder %s1765_s13, %s1381_s9 }
  0x9c   : > { %p1378_p1 = pnand %p1376_p12, %p1994_p8  ;;  %p1384_p0 = scmp.lt.s32.totalorder %s1382_s3, %s1375_s16 }
  0x9e   : > { %p1379_p6 = pneg %p1378_p1  ;;  %p1385_p4 = por %p1384_p0, %p1383_p10 }
  0xa0   : > { %p1386_p9 = pnand %p1385_p4, %p1379_p6 }
  0xa2   : > { %1389 = shalt.err (!%p1386_p9)
}
  0xa3   : > { %p1995_p11 = scmp.ne.s32.totalorder %s1985_s19, 0  ;;  %s1390_s8 = scalar_lea.hbm %s1712_s10, 128 }
  0xa4   : > { %p1391_p13 = scmp.ne.s32.totalorder %s1712_s10, %s1390_s8  ;;  %s1395_s6 = scalar_lea.hbm %s1940_s2, 256 }
  0xa5   : > { %1148 = dma.hbm_to_vmem [thread:$0]  (!%p1995_p11), %s1761_s7, 64, %s1765_s13, %s252_s11  }
  0xa6   : > { %p1393_p7 = pnand %p1391_p13, %p1994_p8  ;;  %p1396_p3 = scmp.lt.u32.totalorder %s1712_s10, %s1940_s2 }
  0xa7   : > { %p1397_p5 = scmp.lt.u32.totalorder %s1395_s6, %s1390_s8  ;;  %p1399_p1 = scmp.lt.u32.totalorder %s1390_s8, %s1712_s10 }
  0xa8   : > { %p1394_p2 = pneg %p1393_p7 }
  0xa9   : > { %p1398_p12 = por %p1397_p5, %p1396_p3 }
  0xab   : > { %p1400_p6 = por %p1399_p1, %p1398_p12 }
  0xad   : > { %p1401_p10 = pnand %p1400_p6, %p1394_p2 }
  0xaf   : > { %1404 = shalt.err (!%p1401_p10)
}
  0xb0   : > { %s1405_s7 = scalar_lea.vmem %s1767_s12, 128  ;;  %s1507_s13 = smov [#allocation7]  }
  0xb1   : > { %p1406_p0 = scmp.ne.s32.totalorder %s1767_s12, %s1405_s7  ;;  %s1410_s11 = sshll.u32 %s1507_s13, 4  ;;  %s1411_s11 = int_to_ptr.vmem [resolvable:$false] %s1410_s11 }
  0xb2   : > { %s1412_s20 = scalar_lea.vmem %s1411_s11, 256  ;;  %p1413_p13 = scmp.lt.s32.totalorder %s1767_s12, %s1411_s11 }
  0xb3   : > { %p1408_p4 = pnand %p1406_p0, %p1994_p8  ;;  %p1414_p7 = scmp.lt.s32.totalorder %s1412_s20, %s1405_s7 }
  0xb5   : > { %p1409_p9 = pneg %p1408_p4  ;;  %p1415_p3 = por %p1414_p7, %p1413_p13 }
  0xb7   : > { %p1416_p5 = pnand %p1415_p3, %p1409_p9 }
  0xb9   : > { %1419 = shalt.err (!%p1416_p5)
}
  0xba   : > { %1154 = dma.hbm_to_vmem [thread:$0]  (!%p1995_p11), %s1712_s10, 128, %s1767_s12, %s1677_s30  }
  0xbb   : > { %p1996_p2 = scmp.ne.s32.totalorder %s1977_s29, 0 }
  0xbc   : > { %s1816_s14 = sand.u32 (!%p1996_p2), 1, %s1490_s22   ;;  %p1997_p8 = scmp.ne.s32.totalorder (!%p1996_p2), %s1974_s27, 0 }
  0xbd   : > { %307 = sbr.rel (%p1996_p2) target bundleno = 1141 (0x475), region = 44  ;;  %s963_s23 = sshll.u32 (!%p1996_p2), %s1816_s14, 2 }
  0xbe   : > { %s310_s17 = scalar_lea.sflag (!%p1996_p2), [#allocation3], %s1816_s14  ;;  %s1820_s16 = scalar_lea.vmem (!%p1996_p2), [#allocation2], %s963_s23 }
  0xc4   : > { %1465 = dma.done.wait (%p1997_p8), %s310_s17, 64  }
  0xc5   : > { %1467 = vsyncadd (%p1997_p8), %s310_s17, 4294967232  ;;  %s318_s29 = sand.u32 1, %s1571_s25   ;;  %s1828_s30 = sshll.u32 %s1816_s14, 3 }
  0xc6   : > { %s319_s19 = scalar_lea.sflag [#allocation6], %s318_s29  ;;  %s322_s10 = scalar_lea.vmem [#allocation5], %s1828_s30 }
  0xc7   : > { %1469 = dma.done.wait (%p1997_p8), %s319_s19, 256  }
  0xc8   : > { %1471 = vsyncadd (%p1997_p8), %s319_s19, 4294967040  ;;  %s331_s12 = scalar_lea.vmem [#allocation7], %s1828_s30  ;;  %p1998_p11 = scmp.eq.s32.totalorder %s1571_s25, 0 }
  0xca   : > { %1473 = dma.done.wait (%p1998_p11), [#allocation9], 2048   ;;  %p1999_p12 = pmov %p1998_p11 }
  0xcb   : > { %p2000_p1 = pmov %p1998_p11 }
  0xcc   : > { %1475 = vsyncadd (%p1999_p12), [#allocation9], 4294965248 }
  0xcd   : > { %1477 = dma.done.wait (%p2000_p1), [#allocation12], 1024   ;;  %p2001_p6 = pmov %p2000_p1 }
  0xce   : > { %v1508_v0 = vmov 0.0   ;;  %vm1509_vm0 = vmmov 0   ;;  %v1218_v1 = vld [vmem:[#allocation10] sm:$0xff]   ;;  %v1219_v2 = vld [vmem:[#allocation10 + $0x8] sm:$0xff]   ;;  %v1220_v3 = vld [vmem:[#allocation10 + $0x10] sm:$0xff]   ;;  %v1510_v20 = vmov 0   ;;  %v593_v38 = vlaneseq }
  0xcf   : > { %1479 = vsyncadd (%p2001_p6), [#allocation12], 4294966272  ;;  %1035 = vmatprep.subr.bf16.mxu0 %v1508_v0  ;;  %1051 = vmatprep.mubr.msk.bf16.mxu0 %vm1509_vm0, %v1508_v0  ;;  %v1226_v4 = vld [vmem:[#allocation8] sm:$0xff]   ;;  %v1221_v5 = vld [vmem:[#allocation10 + $0x18] sm:$0xff]   ;;  %v1511_v21 = vmov 1   ;;  %v1512_v22 = vmov 2  }
  0xd0   : > { %1055 = vmatprep.subr.bf16.mxu1 %v1508_v0  ;;  %1071 = vmatprep.mubr.msk.bf16.mxu1 %vm1509_vm0, %v1508_v0  ;;  %v1222_v6 = vld [vmem:[#allocation10 + $0x20] sm:$0xff]   ;;  %v1227_v7 = vld [vmem:[#allocation8 + $0x8] sm:$0xff]   ;;  %v1224_v9 = vld [vmem:[#allocation10 + $0x30] sm:$0xff]   ;;  %v1513_v23 = vmov 3   ;;  %v594_v39 = vand.u32 127, %v593_v38  ;;  %s381_s27 = scalar_lea.vmem [#allocation13], %s1828_s30 }
  0xd1   : > { %1036 = vmatpush3.bf16.msra.mxu0 %v1218_v1  ;;  %1056 = vmatpush3.bf16.xpose.msra.mxu1 %v1226_v4  ;;  %v1223_v8 = vld [vmem:[#allocation10 + $0x28] sm:$0xff]   ;;  %v1228_v10 = vld [vmem:[#allocation8 + $0x10] sm:$0xff]   ;;  %v1225_v11 = vld [vmem:[#allocation10 + $0x38] sm:$0xff]   ;;  %s808_s28 = sshll.u32 %s381_s27, 4  ;;  %s996_s9 = sshll.u32 %s1571_s25, 7  ;;  %s1891_s28 = int_to_ptr.vmem [resolvable:$true] %s808_s28 }
  0xd2   : > { %1037 = vmatprep.subr.bf16.mxu0 %v1508_v0  ;;  %1057 = vmatprep.subr.bf16.mxu1 %v1508_v0  ;;  %v383_v12 = vld [vmem:[%s1820_s16] sm:$0xf]  ;;  %v1230_v14 = vld [vmem:[#allocation8 + $0x20] sm:$0xff]   ;;  %v1231_v15 = vld [vmem:[#allocation8 + $0x28] sm:$0xff]   ;;  %s2002_s18 = sld [smem:[#allocation26_spill]]  ;;  %s795_s6 = scalar_lea.sflag [#allocation4], %s1816_s14 }
  0xd3   : > { %v1229_v13 = vld [vmem:[#allocation8 + $0x18] sm:$0xff]   ;;  %v1232_v16 = vld [vmem:[#allocation8 + $0x30] sm:$0xff]   ;;  %v603_v19 = vld [vmem:[%s322_s10] sm:$0xff]  ;;  %1212 = vset.pattern.permute.xlu1 %v1510_v20  ;;  %1210 = vset.pattern.permute.xlu0 %v1510_v20  ;;  %s1420_s21 = scalar_lea.vmem %s1891_s28, 128  ;;  %p2003_p0 = scmp.ne.s32.totalorder %s1984_s15, 0 }
  0xd4   : > { %v1233_v17 = vld [vmem:[#allocation8 + $0x38] sm:$0xff]   ;;  %606 = vperm.xlu0 %1210, %v603_v19   ;;  %v1234_v57 = vld [vmem:[#allocation11] sm:$0xff]   ;;  %v1235_v59 = vld [vmem:[#allocation11 + $0x8] sm:$0xff]   ;;  %p1421_p10 = scmp.ne.s32.totalorder %s1891_s28, %s1420_s21  ;;  %s1514_s25 = smov [#allocation13]  }
  0xd5   : > { %1038 = vmatpush3.bf16.msra.mxu0 %v1219_v2  ;;  %v604_v18 = vld [vmem:[%s331_s12] sm:$0xff]  ;;  %v1238_v62 = vld [vmem:[#allocation11 + $0x20] sm:$0xff]   ;;  %v1239_v63 = vld [vmem:[#allocation11 + $0x28] sm:$0xff]   ;;  %s1424_s1 = sshll.u32 %s1514_s25, 4  ;;  %s1425_s1 = int_to_ptr.vmem [resolvable:$false] %s1424_s1 }
  0xd6   : > { %1039 = vmatprep.subr.bf16.mxu0 %v1508_v0  ;;  %611 = vperm.xlu1 %1212, %v604_v18   ;;  %v1236_v60 = vld [vmem:[#allocation11 + $0x10] sm:$0xff]   ;;  %v1237_v61 = vld [vmem:[#allocation11 + $0x18] sm:$0xff]   ;;  %p1422_p4 = pnand %p1421_p10, %p2003_p0  ;;  %s1426_s7 = scalar_lea.vmem %s1425_s1, 256 }
  0xd7   : > { %v1240_v1 = vld [vmem:[#allocation11 + $0x30] sm:$0xff]   ;;  %v1241_v2 = vld [vmem:[#allocation11 + $0x38] sm:$0xff]   ;;  %p1427_p13 = scmp.lt.s32.totalorder %s1891_s28, %s1425_s1  ;;  %p1428_p7 = scmp.lt.s32.totalorder %s1426_s7, %s1420_s21 }
  0xd8   : > { %1211 = vset.pattern.permute.xlu0 %v1511_v21  ;;  %s1896_s26 = scalar_lea.hbm %s2002_s18, %s996_s9  ;;  %p1423_p9 = pneg %p1422_p4 }
  0xd9   : > { %1040 = vmatpush3.bf16.msra.mxu0 %v1220_v3  ;;  %1058 = vmatpush3.bf16.xpose.msra.mxu1 %v1227_v7  ;;  %p1429_p3 = por %p1428_p7, %p1427_p13 }
  0xda   : > { %1041 = vmatprep.subr.bf16.mxu0 %v1508_v0  ;;  %1059 = vmatprep.subr.bf16.mxu1 %v1508_v0 }
  0xdb   : > { %1213 = vset.pattern.permute.xlu1 %v1511_v21  ;;  %617 = vperm.xlu0 %1211, %v603_v19   ;;  %p1430_p5 = pnand %p1429_p3, %p1423_p9 }
  0xdc   : > { %621 = vperm.xlu1 %1213, %v604_v18  }
  0xdd   : > { %1042 = vmatpush3.bf16.msra.mxu0 %v1221_v5 }
  0xde   : > { %1043 = vmatprep.subr.bf16.mxu0 %v1508_v0 }
  0xdf   : > { %1215 = vset.pattern.permute.xlu0 %v1512_v22 }
  0xe0   : > { %1214 = vset.pattern.permute.xlu1 %v1512_v22  ;;  %631 = vperm.xlu0 %1215, %v604_v18  }
  0xe1   : > { %1044 = vmatpush3.bf16.msra.mxu0 %v1222_v6  ;;  %1060 = vmatpush3.bf16.xpose.msra.mxu1 %v1228_v10 }
  0xe2   : > { %1045 = vmatprep.subr.bf16.mxu0 %v1508_v0  ;;  %1061 = vmatprep.subr.bf16.mxu1 %v1508_v0 }
  0xe3   : > { %627 = vperm.xlu1 %1214, %v603_v19  }
  0xe4   : > { %1217 = vset.pattern.permute.xlu0 %v1513_v23 }
  0xe5   : > { %1046 = vmatpush3.bf16.msra.mxu0 %v1223_v8 }
  0xe6   : > { %1047 = vmatprep.subr.bf16.mxu0 %v1508_v0 }
  0xe7   : > { %1216 = vset.pattern.permute.xlu1 %v1513_v23 }
  0xe8   : > { %637 = vperm.xlu1 %1216, %v603_v19  }
  0xe9   : > { %1048 = vmatpush3.bf16.msra.mxu0 %v1224_v9  ;;  %1062 = vmatpush3.bf16.xpose.msra.mxu1 %v1229_v13 }
  0xea   : > { %1049 = vmatprep.subr.bf16.mxu0 %v1508_v0  ;;  %1063 = vmatprep.subr.bf16.mxu1 %v1508_v0 }
  0xec   : > { %641 = vperm.xlu1 %1216, %v604_v18  }
  0xed   : > { %1050 = vmatpush3.bf16.msra.mxu0 %v1225_v11 }
  0xee   : > { %1075 = vmatprep.subr.bf16.mxu0 %v1508_v0 }
  0xf0   : > { %1052 = vmatmul.mubr.bf16.vlgmr.msra.gmra.mrb[0].mxu0 %v383_v12 }
  0xf1   : > { %1076 = vmatpush3.bf16.msra.mxu0 %v1226_v4  ;;  %1091 = vmatprep.mubr.msk.bf16.mxu0 %vm1509_vm0, %v1508_v0 }
  0xf2   : > { %1077 = vmatprep.subr.bf16.mxu0 %v1508_v0  ;;  %1064 = vmatpush3.bf16.xpose.msra.mxu1 %v1230_v14 }
  0xf3   : > { %1065 = vmatprep.subr.bf16.mxu1 %v1508_v0 }
  0xf5   : > { %1078 = vmatpush3.bf16.msra.mxu0 %v1227_v7 }
  0xf6   : > { %1079 = vmatprep.subr.bf16.mxu0 %v1508_v0 }
  0xf9   : > { %1080 = vmatpush3.bf16.msra.mxu0 %v1228_v10 }
  0xfa   : > { %1081 = vmatprep.subr.bf16.mxu0 %v1508_v0  ;;  %1066 = vmatpush3.bf16.xpose.msra.mxu1 %v1231_v15 }
  0xfb   : > { %1067 = vmatprep.subr.bf16.mxu1 %v1508_v0 }
  0xfd   : > { %1082 = vmatpush3.bf16.msra.mxu0 %v1229_v13 }
  0xfe   : > { %1083 = vmatprep.subr.bf16.mxu0 %v1508_v0 }
 0x101   : > { %1084 = vmatpush3.bf16.msra.mxu0 %v1230_v14 }
 0x102   : > { %1085 = vmatprep.subr.bf16.mxu0 %v1508_v0  ;;  %1068 = vmatpush3.bf16.xpose.msra.mxu1 %v1232_v16 }
 0x103   : > { %1069 = vmatprep.subr.bf16.mxu1 %v1508_v0 }
 0x105   : > { %1086 = vmatpush3.bf16.msra.mxu0 %v1231_v15 }
 0x106   : > { %1087 = vmatprep.subr.bf16.mxu0 %v1508_v0 }
 0x109   : > { %1088 = vmatpush3.bf16.msra.mxu0 %v1232_v16 }
 0x10a   : > { %1089 = vmatprep.subr.bf16.mxu0 %v1508_v0  ;;  %1070 = vmatpush3.bf16.xpose.msra.mxu1 %v1233_v17 }
 0x10d   : > { %1090 = vmatpush3.bf16.msra.mxu0 %v1233_v17 }
 0x10e   : > { %1095 = vmatprep.subr.bf16.mxu0 %v1508_v0 }
 0x153   : > { %v607_v37 = vpop.permute.xlu0 %606 }
 0x154   : > { %vm608_vm1 = vcmp.eq.s32.totalorder %v594_v39, %v607_v37 }
 0x155   : > { %v612_v29 = vpop.permute.xlu1 %611 }
 0x156   : > { %v614_v45 = vsel %vm608_vm1, %v612_v29, 0.0 }
 0x15a   : > { %v618_v41 = vpop.permute.xlu0 %617 }
 0x15b   : > { %v622_v36 = vpop.permute.xlu1 %621  ;;  %vm619_vm2 = vcmp.eq.s32.totalorder %v594_v39, %v618_v41 }
 0x15c   : > { %v624_v46 = vsel %vm619_vm2, %v622_v36, 0.0 }
 0x15d   : > { %v625_v48 = vadd.f32 %v624_v46, %v614_v45 }
 0x15f   : > { %v632_v47 = vpop.permute.xlu0 %631 }
 0x162   : > { %v628_v40 = vpop.permute.xlu1 %627 }
 0x163   : > { %vm629_vm3 = vcmp.eq.s32.totalorder %v594_v39, %v628_v40 }
 0x164   : > { %v634_v49 = vsel %vm629_vm3, %v632_v47, 0.0 }
 0x165   : > { %v635_v51 = vadd.f32 %v634_v49, %v625_v48 }
 0x167   : > { %v638_v44 = vpop.permute.xlu1 %637 }
 0x168   : > { %vm639_vm4 = vcmp.eq.s32.totalorder %v594_v39, %v638_v44 }
 0x16b   : > { %v642_v50 = vpop.permute.xlu1 %641 }
 0x16c   : > { %v644_v52 = vsel %vm639_vm4, %v642_v50, 0.0 }
 0x16d   : > { %v645_v55 = vadd.f32 %v644_v52, %v635_v51 }
 0x1c3   : > { %v498_v24 = vpop.f32.mrb[0].mxu0 }
 0x1c4   : > { %v504_v25 = vpack.c.bf16 %v498_v24, %v498_v24  ;;  %v1053_v26 = vpop.f32.mrb[1].mxu0 }
 0x1c5   : > { %v501_v27 = vpop.f32.mrb[2].mxu0 }
 0x1c6   : > { %v1054_v28 = vpop.f32.mrb[3].mxu0  ;;  %1072 = vmatmul.mubr.bf16.vlgmr.msra.gmra.mrb[0].mxu1 %v504_v25 }
 0x299   : > { %v587_v30 = vpop.f32.mrb[0].mxu1 }
 0x29a   : > { %v986_v31 = vmul.f32 -1.702, %v587_v30  ;;  %v1073_v32 = vpop.f32.mrb[1].mxu1 }
 0x29b   : > { %v590_v33 = vpop.f32.mrb[2].mxu1 }
 0x29c   : > { %v597_v34 = vmul.f32 1.442695, %v986_v31  ;;  %v1074_v35 = vpop.f32.mrb[3].mxu1 }
 0x29e   : > { %1242 = vpow2.f32 %v597_v34 }
 0x2a8   : > { %v1243_v42 = vpop.eup %1242 }
 0x2a9   : > { %v599_v43 = vadd.f32 1.0, %v1243_v42 }
 0x2ab   : > { %1244 = vrcp.f32 %v599_v43 }
 0x2b5   : > { %v1245_v53 = vpop.eup %1244 }
 0x2b6   : > { %v602_v54 = vmul.f32 %v1245_v53, %v587_v30 }
 0x2b8   : > { %v646_v56 = vmul.f32 %v645_v55, %v602_v54 }
 0x2ba   : > { %v647_v58 = vpack.c.bf16 %v646_v56, %v646_v56 }
 0x2bc   : > { %1092 = vmatmul.mubr.bf16.vlgmr.msra.gmra.mrb[4].mxu0 %v647_v58 }
 0x2bd   : > { %1096 = vmatpush3.bf16.msra.mxu0 %v1234_v57  ;;  %1111 = vmatprep.mubr.msk.bf16.mxu0 %vm1509_vm0, %v1508_v0 }
 0x2be   : > { %1097 = vmatprep.subr.bf16.mxu0 %v1508_v0 }
 0x2c1   : > { %1098 = vmatpush3.bf16.msra.mxu0 %v1235_v59 }
 0x2c2   : > { %1099 = vmatprep.subr.bf16.mxu0 %v1508_v0 }
 0x2c5   : > { %1100 = vmatpush3.bf16.msra.mxu0 %v1236_v60 }
 0x2c6   : > { %1101 = vmatprep.subr.bf16.mxu0 %v1508_v0 }
 0x2c9   : > { %1102 = vmatpush3.bf16.msra.mxu0 %v1237_v61 }
 0x2ca   : > { %1103 = vmatprep.subr.bf16.mxu0 %v1508_v0 }
 0x2cd   : > { %1104 = vmatpush3.bf16.msra.mxu0 %v1238_v62 }
 0x2ce   : > { %1105 = vmatprep.subr.bf16.mxu0 %v1508_v0 }
 0x2d1   : > { %1106 = vmatpush3.bf16.msra.mxu0 %v1239_v63 }
 0x2d2   : > { %1107 = vmatprep.subr.bf16.mxu0 %v1508_v0 }
 0x2d5   : > { %1108 = vmatpush3.bf16.msra.mxu0 %v1240_v1 }
 0x2d6   : > { %1109 = vmatprep.subr.bf16.mxu0 %v1508_v0 }
 0x2d9   : > { %1110 = vmatpush3.bf16.msra.mxu0 %v1241_v2 }
 0x38f   : > { %v682_v3 = vpop.f32.mrb[4].mxu0 }
 0x390   : > { %v688_v4 = vpack.c.bf16 %v682_v3, %v682_v3  ;;  %v1093_v5 = vpop.f32.mrb[5].mxu0 }
 0x391   : > { %v685_v6 = vpop.f32.mrb[6].mxu0 }
 0x392   : > { %v1094_v7 = vpop.f32.mrb[7].mxu0  ;;  %1112 = vmatmul.mubr.bf16.vlgmr.msra.gmra.mrb[8].mxu0 %v688_v4 }
 0x465   : > { %v787_v0 = vpop.f32.mrb[8].mxu0 }
 0x466   : > { %793 = vst [vmem:[%s381_s27] sm:$0xff] %v787_v0  ;;  %v1113_v8 = vpop.f32.mrb[9].mxu0 }
 0x467   : > { %v790_v9 = vpop.f32.mrb[10].mxu0 }
 0x468   : > { %1433 = shalt.err (!%p1430_p5)
}
 0x469   : > { %s1434_s13 = scalar_lea.hbm %s1896_s26, 128  ;;  %s1438_s14 = scalar_lea.hbm %s2002_s18, 256 }
 0x46a   : > { %p1435_p2 = scmp.ne.s32.totalorder %s1896_s26, %s1434_s13  ;;  %p1439_p12 = scmp.lt.u32.totalorder %s1896_s26, %s2002_s18 }
 0x46b   : > { %p1440_p1 = scmp.lt.u32.totalorder %s1438_s14, %s1434_s13  ;;  %p1442_p10 = scmp.lt.u32.totalorder %s1434_s13, %s1896_s26 }
 0x46c   : > { %p1436_p8 = pnand %p1435_p2, %p2003_p0 }
 0x46d   : > { %p1441_p6 = por %p1440_p1, %p1439_p12 }
 0x46e   : > { %p1437_p11 = pneg %p1436_p8 }
 0x46f   : > { %p1443_p4 = por %p1442_p10, %p1441_p6 }
 0x471   : > { %p1444_p9 = pnand %p1443_p4, %p1437_p11 }
 0x473   : > { %1447 = shalt.err (!%p1444_p9)
}
 0x474   : > { %1133 = dma.vmem_to_hbm [thread:$0]  (%p2003_p0), %s1891_s28, 128, %s1896_s26, %s795_s6   ;;  %v1114_v10 = vpop.f32.mrb[11].mxu0 }
 0x475 PF: > { %s2004_s16 = sld [smem:[#allocation19_spill]]  ;;  %s2005_s29 = sld [smem:[#allocation21_spill]] }
 0x476   : > { %p2007_p7 = scmp.ge.s32.totalorder %s1498_s24, 2 }
 0x47b   : > { %s820_s30 = sand.u32 1, %s2004_s16   ;;  %p2006_p13 = scmp.ne.s32.totalorder %s2005_s29, 0 }
 0x47c   : > { %s821_s19 = scalar_lea.sflag [#allocation4], %s820_s30 }
 0x47d   : > { %p1156_p3 = pnand %p2007_p7, %p2006_p13 }
 0x47f   : > { %1481 = dma.done.wait (!%p1156_p3), %s821_s19, 128  }
 0x480   : > { %1483 = vsyncadd (!%p1156_p3), %s821_s19, 4294967168  ;;  %s2008_s24 = sld [smem:[#allocation22_spill]]  ;;  %s2009_s10 = sld [smem:[#allocation20_spill]] }
 0x481   : > { %s2010_s23 = sld [smem:[#allocation23_spill]]  ;;  %s2011_s21 = smov %s1490_s22 }
 0x486   : > { %p24_p5 = scmp.ge.s32.totalorder %s2008_s24, 4   ;;  %s2012_s22 = smov %s2009_s10 }
 0x488   :  { %26 = sbr.rel (!%p24_p5) target bundleno = 13 (0xd), region = 125 }
 0x48f   :  { %826 = vsyncpa [#allocation3], 1 }
 0x490   :  { %828 = vsyncpa [#allocation3 + $0x1], 1 }
 0x491   :  { %829 = vsyncpa [#allocation6], 1 }
 0x492   :  { %831 = vsyncpa [#allocation6 + $0x1], 1 }
 0x493   :  { %832 = vsyncpa [#allocation9], 1 }
 0x494   :  { %833 = vsyncpa [#allocation12], 1 }
 0x495   :  { %834 = vsyncpa [#allocation4], 1 }
 0x496   :  { %836 = vsyncpa [#allocation4 + $0x1], 1 }

</bundles_post_ra>
